<compile_context>
chip_gen: v5e
topology: v5e:2x2
jax: 0.10.0
libtpu: 0.0.40
codegen_flags: <defaults>
</compile_context>

<pallas_src>
import math
import functools

import jax
import jax.numpy as jnp
from jax.experimental import pallas as pl
from jax.experimental.pallas import tpu as pltpu

LN_EPS = 1e-5          # torch.nn.LayerNorm default
BF16 = jnp.bfloat16


def _layernorm(h, w, b):
    mu = jnp.mean(h, axis=-1, keepdims=True)
    var = jnp.mean((h - mu) ** 2, axis=-1, keepdims=True)
    return (h - mu) * jax.lax.rsqrt(var + LN_EPS) * w + b


# ----------------------------------------------------------------------------
# Fused encoder-stack + classifier kernel
# ----------------------------------------------------------------------------
def _naim_kernel(num_heads, num_layers, BT, L, F,
                 x_ref, mask_ref,
                 ln1w, ln1b, wqkv, bqkv, wo, bo,
                 ln2w, ln2b, w1, b1, w2, b2,
                 nw, nb, clsw, clsb,
                 out_ref, act_ref):
    """One (batch-tile, layer) grid step of NAIM.

    grid = (num_batch_tiles, num_layers); the layer axis is 'arbitrary' and the
    (BT*L, D) f32 activations are carried across it in the VMEM scratch
    `act_ref`.  Only the current layer's bf16 weights are resident.  The final
    LayerNorm + classifier run fused in the last layer step and write the
    lane-dense (BT, Cp) logits block.
    """
    layer = pl.program_id(1)
    D = x_ref.shape[-1]
    dh = D // num_heads

    @pl.when(layer == 0)
    def _():
        act_ref[...] = x_ref[...]

    x = act_ref[...]                       # (BT*L, D) f32 activations
    maskb = mask_ref[...]                  # (BT, 1, L) additive column mask

    # ---------------- attention sub-layer ----------------
    xn = _layernorm(x, ln1w[0], ln1b[0])
    # fused QKV projection; 1/sqrt(dh) folded into the Q columns by the wrapper
    qkv = jnp.dot(xn.astype(BF16), wqkv[0],
                  preferred_element_type=jnp.float32) + bqkv[0]
    qkv = jnp.maximum(qkv, 0.0)            # MultiHeadAttention.activation (relu)
    q3 = qkv[:, 0 * D:1 * D].reshape(BT, L, D)
    k3 = qkv[:, 1 * D:2 * D].reshape(BT, L, D)
    v3 = qkv[:, 2 * D:3 * D].reshape(BT, L, D)

    # TODO(synk): heads handled by a short unrolled loop (dh-wide lane slices)
    # instead of a two-batch-dim dot_general -- Mosaic support for >1 batch
    # dim is not guaranteed and num_heads is small; the output projection is
    # still a single D-wide matmul.
    head_outs = []
    for h in range(num_heads):
        sl = slice(h * dh, (h + 1) * dh)
        s = jnp.einsum('bqe,bke->bqk',
                       q3[:, :, sl].astype(BF16), k3[:, :, sl].astype(BF16),
                       preferred_element_type=jnp.float32) + maskb
        # softmax over keys (f32).  A sample with ALL features missing gives an
        # all -inf row -> NaN, identical to the PyTorch reference.
        m = jnp.max(s, axis=-1, keepdims=True)
        e = jnp.exp(s - m)
        p = e * pl.reciprocal(jnp.sum(e, axis=-1, keepdims=True), approx=True)
        o = jnp.einsum('bqk,bke->bqe',
                       p.astype(BF16), v3[:, :, sl].astype(BF16),
                       preferred_element_type=jnp.float32)     # (BT, L, dh)
        head_outs.append(o.reshape(BT * L, dh))
    o2d = jnp.concatenate(head_outs, axis=-1)                  # (BT*L, D)

    attn = jnp.dot(o2d.astype(BF16), wo[0],
                   preferred_element_type=jnp.float32) + bo[0]
    attn = jnp.maximum(attn, 0.0)          # linear_o then relu
    x = x + attn                           # residual 1

    # ---------------- feed-forward sub-layer ----------------
    x = _layernorm(x, ln2w[0], ln2b[0])
    hdn = jnp.maximum(jnp.dot(x.astype(BF16), w1[0],
                              preferred_element_type=jnp.float32) + b1[0], 0.0)
    x = x + jnp.dot(hdn.astype(BF16), w2[0],
                    preferred_element_type=jnp.float32) + b2[0]
    act_ref[...] = x

    # ------ final LayerNorm + fused classifier on the last layer ------
    @pl.when(layer == num_layers - 1)
    def _():
        y = _layernorm(act_ref[...], nw[...], nb[...])         # (BT*L, D) f32
        y3 = y.reshape(BT, L, D).astype(BF16)
        Cp = out_ref.shape[-1]
        logits = jnp.zeros((BT, Cp), jnp.float32)
        # embed_vector_fun='cat': flatten(y) @ cls_w == sum_t y[:,t,:] @ W_t.
        # Loops only over the F REAL tokens, so padded tokens cannot leak in.
        for t in range(F):
            logits = logits + jnp.dot(y3[:, t, :], clsw[t],
                                      preferred_element_type=jnp.float32)
        out_ref[0] = logits + clsb[...]


# ----------------------------------------------------------------------------
# Pallas wrapper
# ----------------------------------------------------------------------------
def _vmem_limit_bytes(D, FF, F, Cp, BT, Lp):
    M = BT * Lp
    layer_w = 2 * (3 * D * D + D * D + 2 * D * FF)          # bf16 weights
    layer_s = 4 * (3 * D + 4 * D + FF + 4 * D)              # f32 biases + LN
    const = 2 * F * D * Cp + 4 * Cp + 8 * D
    act_io = 4 * M * D * 2 + 4 * BT * Lp * 2
    scratch = 4 * M * D
    inter = 4 * M * (3 * D + FF + 2 * D) + 4 * BT * Lp * Lp * 4
    out = 4 * BT * Cp * 2
    est = 2 * (layer_w + layer_s) + 2 * const + act_io + scratch + inter + out
    return int(min(64 * 2 ** 20, max(16 * 2 ** 20, 2 * est)))


def naim_encode_and_classify(x2d, mask, params, num_heads, Bp, Lp, BT, F):
    _, D = x2d.shape
    NL = params["WQ"].shape[0]
    FF = params["W1"].shape[-1]
    C = params["cls_w"].shape[-1]
    Cp = ((C + 127) // 128) * 128
    dh = D // num_heads
    scale = 1.0 / math.sqrt(dh)

    # fused QKV weight (bf16); attention scale folded into the Q columns
    # (valid because relu(s*z) == s*relu(z) for s > 0)
    wqkv = jnp.concatenate([params["WQ"] * scale, params["WK"], params["WV"]],
                           axis=-1).astype(BF16)                  # (NL, D, 3D)
    bqkv = jnp.concatenate([params["BQ"] * scale, params["BK"], params["BV"]],
                           axis=-1)                               # (NL, 1, 3D)
    wo = params["WO"].astype(BF16)
    w1 = params["W1"].astype(BF16)
    w2 = params["W2"].astype(BF16)
    clsw = jnp.pad(params["cls_w"].reshape(F, D, C),
                   ((0, 0), (0, 0), (0, Cp - C))).astype(BF16)    # (F, D, Cp)
    clsb = jnp.pad(params["cls_b"], ((0, 0), (0, Cp - C)))        # (1, Cp)

    nbt = Bp // BT
    M = BT * Lp

    def lspec(arr):   # per-layer stacked weight: one layer per grid step
        nd = arr.ndim
        return pl.BlockSpec((1,) + arr.shape[1:],
                            lambda i, l, _nd=nd: (l,) + (0,) * (_nd - 1))

    def cspec(arr):   # constant block, resident for the whole grid
        nd = arr.ndim
        return pl.BlockSpec(arr.shape, lambda i, l, _nd=nd: (0,) * _nd)

    per_layer_inputs = [params["LN1W"], params["LN1B"], wqkv, bqkv, wo,
                        params["BO"], params["LN2W"], params["LN2B"],
                        w1, params["B1"], w2, params["B2"]]
    const_inputs = [params["norm_w"], params["norm_b"], clsw, clsb]

    kernel = functools.partial(_naim_kernel, num_heads, NL, BT, Lp, F)

    out = pl.pallas_call(
        kernel,
        out_shape=jax.ShapeDtypeStruct((nbt, BT, Cp), jnp.float32),
        grid=(nbt, NL),
        in_specs=[pl.BlockSpec((M, D), lambda i, l: (i, 0)),
                  pl.BlockSpec((BT, 1, Lp), lambda i, l: (i, 0, 0))]
                 + [lspec(a) for a in per_layer_inputs]
                 + [cspec(a) for a in const_inputs],
        out_specs=pl.BlockSpec((1, BT, Cp), lambda i, l: (i, 0, 0)),
        scratch_shapes=[pltpu.VMEM((M, D), jnp.float32)],
        compiler_params=pltpu.CompilerParams(
            dimension_semantics=("parallel", "arbitrary"),
            vmem_limit_bytes=_vmem_limit_bytes(D, FF, F, Cp, BT, Lp)),
    )(x2d, mask, *per_layer_inputs, *const_inputs)
    return out.reshape(nbt * BT, Cp)[:, :C]


# ----------------------------------------------------------------------------
# NAIM forward (tokenization / mask construction is glue in plain JAX)
# ----------------------------------------------------------------------------
def feature_embedding(x, tok_w, tok_b):
    # TODO(synk): CategoricalFeatureTokenizer source not provided; numerical
    # feature tokenization approximated as value-scaled embedding (zero row for
    # the NaN padding index) plus a per-feature bias, matching the
    # cardinalities=[2], padding_idx=1 semantics of the reference __init__.
    B, F = x.shape
    idx = jnp.isnan(x).astype(jnp.int32)              # 0 = present, 1 = missing
    vals = jnp.nan_to_num(x, nan=0.0)
    emb = tok_w[jnp.arange(F)[None, :], idx]          # (B, F, D)
    return emb * vals[..., None] + tok_b[None, :, :]


def naim_forward(x, params, num_heads):
    B, F = x.shape
    D = params["tok_b"].shape[-1]

    emb = feature_embedding(x, params["tok_w"], params["tok_b"])       # (B,F,D)
    # TabularMasker(mask_type=0, '-inf'): column j masked iff x[b, j] is NaN.
    col_mask = jnp.where(jnp.isnan(x), -jnp.inf, 0.0).astype(jnp.float32)

    # pad token axis to the f32 sublane tile; padded key columns are -inf so
    # they never influence real tokens.
    Lp = ((F + 7) // 8) * 8
    if Lp != F:
        emb = jnp.pad(emb, ((0, 0), (0, Lp - F), (0, 0)))
        col_mask = jnp.pad(col_mask, ((0, 0), (0, Lp - F)),
                           constant_values=-jnp.inf)

    # batch tiling: guarantee >= 2 grid steps so both v7x TensorCores get work
    if B >= 256:
        BT = 128
    else:
        BT = max(1, (B + 1) // 2)
    Bp = ((B + BT - 1) // BT) * BT
    if Bp != B:
        emb = jnp.pad(emb, ((0, Bp - B), (0, 0), (0, 0)))
        col_mask = jnp.pad(col_mask, ((0, Bp - B), (0, 0)))   # padded rows finite

    mask = col_mask[:, None, :]               # (Bp, 1, Lp) additive mask
    x2d = emb.reshape(Bp * Lp, D)             # batch-major (b, t) row order

    logits = naim_encode_and_classify(x2d, mask, params, num_heads,
                                      Bp, Lp, BT, F)
    return logits[:B, :]


# ----------------------------------------------------------------------------
# Deterministic parameter construction (weights stacked per layer)
# ----------------------------------------------------------------------------
def init_params(key, input_size, d_token, num_heads, ff_dim, num_layers,
                output_size):
    D, FF, NL, F, C = d_token, ff_dim, num_layers, input_size, output_size

    def keystream(k):
        while True:
            k, sub = jax.random.split(k)
            yield sub

    ks = keystream(key)

    def unif(shape, fan_in):
        bound = 1.0 / math.sqrt(fan_in)
        return jax.random.uniform(next(ks), shape, jnp.float32, -bound, bound)

    def stack(shape, fan_in):
        return jnp.stack([unif(shape, fan_in) for _ in range(NL)])

    tok_w = jax.random.normal(next(ks), (F, 2, D), jnp.float32) * 0.02
    tok_w = tok_w.at[:, 1, :].set(0.0)          # padding_idx = 1 -> zero row
    tok_b = jax.random.normal(next(ks), (F, D), jnp.float32) * 0.02

    return dict(
        tok_w=tok_w, tok_b=tok_b,
        LN1W=jnp.ones((NL, 1, D), jnp.float32),
        LN1B=jnp.zeros((NL, 1, D), jnp.float32),
        WQ=stack((D, D), D), BQ=stack((1, D), D),
        WK=stack((D, D), D), BK=stack((1, D), D),
        WV=stack((D, D), D), BV=stack((1, D), D),
        WO=stack((D, D), D), BO=stack((1, D), D),
        LN2W=jnp.ones((NL, 1, D), jnp.float32),
        LN2B=jnp.zeros((NL, 1, D), jnp.float32),
        W1=stack((D, FF), D), B1=stack((1, FF), D),
        W2=stack((FF, D), FF), B2=stack((1, D), FF),
        norm_w=jnp.ones((1, D), jnp.float32),
        norm_b=jnp.zeros((1, D), jnp.float32),
        cls_w=unif((F * D, C), F * D),
        cls_b=unif((1, C), F * D),
    )


if __name__ == "__main__":
    # Small NAIM config: 8 tabular features, d_token=32, 4 heads, ff_dim=64,
    # 2 encoder layers, 3 output classes, eval-mode forward.
    B, INPUT_SIZE, D_TOKEN, NUM_HEADS, FF_DIM, NUM_LAYERS, OUTPUT_SIZE = \
        2, 8, 32, 4, 64, 2, 3

    key = jax.random.PRNGKey(0)
    kx, kp = jax.random.split(key)

    x = jax.random.normal(kx, (B, INPUT_SIZE), jnp.float32)
    # introduce missing values (NaN) like real tabular data
    x = x.at[0, 2].set(jnp.nan)
    x = x.at[1, 5].set(jnp.nan)

    params = init_params(kp, INPUT_SIZE, D_TOKEN, NUM_HEADS, FF_DIM,
                         NUM_LAYERS, OUTPUT_SIZE)

    logits = naim_forward(x, params, NUM_HEADS)
    logits = jax.block_until_ready(logits)

    assert logits.shape == (B, OUTPUT_SIZE)
    assert bool(jnp.all(jnp.isfinite(logits)))
    print("KERNEL_OK")
</pallas_src>

<mosaic_0001>
module attributes {stable_mosaic.version = 11 : i64} {
  func.func @_naim_kernel(%arg0: i32, %arg1: i32, %arg2: memref<8x32xf32, #tpu.memory_space<vmem>>, %arg3: memref<1x1x8xf32, #tpu.memory_space<vmem>>, %arg4: memref<1x1x32xf32, #tpu.memory_space<vmem>>, %arg5: memref<1x1x32xf32, #tpu.memory_space<vmem>>, %arg6: memref<1x32x96xbf16, #tpu.memory_space<vmem>>, %arg7: memref<1x1x96xf32, #tpu.memory_space<vmem>>, %arg8: memref<1x32x32xbf16, #tpu.memory_space<vmem>>, %arg9: memref<1x1x32xf32, #tpu.memory_space<vmem>>, %arg10: memref<1x1x32xf32, #tpu.memory_space<vmem>>, %arg11: memref<1x1x32xf32, #tpu.memory_space<vmem>>, %arg12: memref<1x32x64xbf16, #tpu.memory_space<vmem>>, %arg13: memref<1x1x64xf32, #tpu.memory_space<vmem>>, %arg14: memref<1x64x32xbf16, #tpu.memory_space<vmem>>, %arg15: memref<1x1x32xf32, #tpu.memory_space<vmem>>, %arg16: memref<1x32xf32, #tpu.memory_space<vmem>>, %arg17: memref<1x32xf32, #tpu.memory_space<vmem>>, %arg18: memref<8x32x128xbf16, #tpu.memory_space<vmem>>, %arg19: memref<1x128xf32, #tpu.memory_space<vmem>>, %arg20: memref<1x1x128xf32, #tpu.memory_space<vmem>>, %arg21: memref<8x32xf32, #tpu.memory_space<vmem>>) attributes {dimension_semantics = [#tpu.dimension_semantics<parallel>, #tpu.dimension_semantics<arbitrary>], iteration_bounds = array<i64: 2, 2>, scalar_prefetch = 0 : i64, scratch_operands = 1 : i64, tpu.core_type = #tpu.core_type<tc>, window_params = [{transform_indices = @transform_0, window_bounds = array<i64: 8, 32>}, {transform_indices = @transform_1, window_bounds = array<i64: 1, 1, 8>}, {transform_indices = @transform_2, window_bounds = array<i64: 1, 1, 32>}, {transform_indices = @transform_3, window_bounds = array<i64: 1, 1, 32>}, {transform_indices = @transform_4, window_bounds = array<i64: 1, 32, 96>}, {transform_indices = @transform_5, window_bounds = array<i64: 1, 1, 96>}, {transform_indices = @transform_6, window_bounds = array<i64: 1, 32, 32>}, {transform_indices = @transform_7, window_bounds = array<i64: 1, 1, 32>}, {transform_indices = @transform_8, window_bounds = array<i64: 1, 1, 32>}, {transform_indices = @transform_9, window_bounds = array<i64: 1, 1, 32>}, {transform_indices = @transform_10, window_bounds = array<i64: 1, 32, 64>}, {transform_indices = @transform_11, window_bounds = array<i64: 1, 1, 64>}, {transform_indices = @transform_12, window_bounds = array<i64: 1, 64, 32>}, {transform_indices = @transform_13, window_bounds = array<i64: 1, 1, 32>}, {pipeline_mode = #tpu.pipeline_mode<synchronous>, transform_indices = @transform_14, window_bounds = array<i64: 1, 32>}, {pipeline_mode = #tpu.pipeline_mode<synchronous>, transform_indices = @transform_15, window_bounds = array<i64: 1, 32>}, {pipeline_mode = #tpu.pipeline_mode<synchronous>, transform_indices = @transform_16, window_bounds = array<i64: 8, 32, 128>}, {pipeline_mode = #tpu.pipeline_mode<synchronous>, transform_indices = @transform_17, window_bounds = array<i64: 1, 128>}, {transform_indices = @transform_18, window_bounds = array<i64: 1, 1, 128>}]} {
    %c0_i32 = arith.constant 0 : i32
    %0 = arith.cmpi eq, %arg1, %c0_i32 : i32
    %1 = arith.extui %0 : i1 to i32
    %c0_i32_0 = arith.constant 0 : i32
    %2 = arith.cmpi ne, %1, %c0_i32_0 : i32
    scf.if %2 {
      %c0_76 = arith.constant 0 : index
      %c0_77 = arith.constant 0 : index
      %196 = vector.load %arg2[%c0_76, %c0_77] : memref<8x32xf32, #tpu.memory_space<vmem>>, vector<8x32xf32>
      %c0_78 = arith.constant 0 : index
      %c0_79 = arith.constant 0 : index
      %197 = vector.load %arg21[%c0_78, %c0_79] : memref<8x32xf32, #tpu.memory_space<vmem>>, vector<8x32xf32>
      tpu.vector_store %arg21[%c0_78, %c0_79], %196 {strides = array<i32>} : memref<8x32xf32, #tpu.memory_space<vmem>>, vector<8x32xf32>,
    } else {
    }
    %c0 = arith.constant 0 : index
    %c0_1 = arith.constant 0 : index
    %3 = vector.load %arg21[%c0, %c0_1] : memref<8x32xf32, #tpu.memory_space<vmem>>, vector<8x32xf32>
    %c0_2 = arith.constant 0 : index
    %c0_3 = arith.constant 0 : index
    %c0_4 = arith.constant 0 : index
    %4 = vector.load %arg3[%c0_2, %c0_3, %c0_4] : memref<1x1x8xf32, #tpu.memory_space<vmem>>, vector<1x1x8xf32>
    %c0_5 = arith.constant 0 : index
    %c0_6 = arith.constant 0 : index
    %c0_7 = arith.constant 0 : index
    %5 = vector.load %arg4[%c0_5, %c0_6, %c0_7] : memref<1x1x32xf32, #tpu.memory_space<vmem>>, vector<1x1x32xf32>
    %6 = vector.shape_cast %5 : vector<1x1x32xf32> to vector<1x32xf32>
    %c0_8 = arith.constant 0 : index
    %c0_9 = arith.constant 0 : index
    %c0_10 = arith.constant 0 : index
    %7 = vector.load %arg5[%c0_8, %c0_9, %c0_10] : memref<1x1x32xf32, #tpu.memory_space<vmem>>, vector<1x1x32xf32>
    %8 = vector.shape_cast %7 : vector<1x1x32xf32> to vector<1x32xf32>
    %cst = arith.constant dense<0.000000e+00> : vector<8xf32>
    %9 = vector.multi_reduction <add>, %3, %cst [1] : vector<8x32xf32> to vector<8xf32>
    %10 = vector.shape_cast %9 : vector<8xf32> to vector<8x1xf32>
    %cst_11 = arith.constant 3.200000e+01 : f32
    %11 = vector.broadcast %cst_11 : f32 to vector<8x1xf32>
    %12 = arith.divf %10, %11 : vector<8x1xf32>
    %13 = vector.broadcast %12 : vector<8x1xf32> to vector<8x32xf32>
    %14 = arith.subf %3, %13 : vector<8x32xf32>
    %15 = arith.mulf %14, %14 : vector<8x32xf32>
    %cst_12 = arith.constant dense<0.000000e+00> : vector<8xf32>
    %16 = vector.multi_reduction <add>, %15, %cst_12 [1] : vector<8x32xf32> to vector<8xf32>
    %17 = vector.shape_cast %16 : vector<8xf32> to vector<8x1xf32>
    %cst_13 = arith.constant 3.200000e+01 : f32
    %18 = vector.broadcast %cst_13 : f32 to vector<8x1xf32>
    %19 = arith.divf %17, %18 : vector<8x1xf32>
    %20 = vector.broadcast %12 : vector<8x1xf32> to vector<8x32xf32>
    %21 = arith.subf %3, %20 : vector<8x32xf32>
    %cst_14 = arith.constant 9.99999974E-6 : f32
    %22 = vector.broadcast %cst_14 : f32 to vector<8x1xf32>
    %23 = arith.addf %19, %22 : vector<8x1xf32>
    %24 = math.rsqrt %23 : vector<8x1xf32>
    %25 = vector.broadcast %24 : vector<8x1xf32> to vector<8x32xf32>
    %26 = arith.mulf %21, %25 : vector<8x32xf32>
    %27 = vector.broadcast %6 : vector<1x32xf32> to vector<8x32xf32>
    %28 = arith.mulf %26, %27 : vector<8x32xf32>
    %29 = vector.broadcast %8 : vector<1x32xf32> to vector<8x32xf32>
    %30 = arith.addf %28, %29 : vector<8x32xf32>
    %31 = arith.truncf %30 : vector<8x32xf32> to vector<8x32xbf16>
    %c0_15 = arith.constant 0 : index
    %c0_16 = arith.constant 0 : index
    %c0_17 = arith.constant 0 : index
    %32 = vector.load %arg6[%c0_15, %c0_16, %c0_17] : memref<1x32x96xbf16, #tpu.memory_space<vmem>>, vector<1x32x96xbf16>
    %33 = vector.shape_cast %32 : vector<1x32x96xbf16> to vector<32x96xbf16>
    %cst_18 = arith.constant dense<0.000000e+00> : vector<8x96xf32>
    %34 = tpu.matmul %31, %33, %cst_18 {dimension_numbers = #tpu.dot_dimension_numbers<[1], [0], [0], [1], [0, 0, 1, 1], [], []>} : vector<8x32xbf16>, vector<32x96xbf16>, vector<8x96xf32> -> vector<8x96xf32>
    %c0_19 = arith.constant 0 : index
    %c0_20 = arith.constant 0 : index
    %c0_21 = arith.constant 0 : index
    %35 = vector.load %arg7[%c0_19, %c0_20, %c0_21] : memref<1x1x96xf32, #tpu.memory_space<vmem>>, vector<1x1x96xf32>
    %36 = vector.shape_cast %35 : vector<1x1x96xf32> to vector<1x96xf32>
    %37 = vector.broadcast %36 : vector<1x96xf32> to vector<8x96xf32>
    %38 = arith.addf %34, %37 : vector<8x96xf32>
    %cst_22 = arith.constant 0.000000e+00 : f32
    %39 = vector.broadcast %cst_22 : f32 to vector<8x96xf32>
    %40 = arith.maximumf %38, %39 : vector<8x96xf32>
    %41 = vector.extract_strided_slice %40 {offsets = [0, 0], sizes = [8, 32], strides = [1, 1]} : vector<8x96xf32> to vector<8x32xf32>
    %42 = vector.shape_cast %41 : vector<8x32xf32> to vector<1x8x32xf32>
    %43 = vector.extract_strided_slice %40 {offsets = [0, 32], sizes = [8, 32], strides = [1, 1]} : vector<8x96xf32> to vector<8x32xf32>
    %44 = vector.shape_cast %43 : vector<8x32xf32> to vector<1x8x32xf32>
    %45 = vector.extract_strided_slice %40 {offsets = [0, 64], sizes = [8, 32], strides = [1, 1]} : vector<8x96xf32> to vector<8x32xf32>
    %46 = vector.shape_cast %45 : vector<8x32xf32> to vector<1x8x32xf32>
    %47 = vector.extract_strided_slice %42 {offsets = [0, 0, 0], sizes = [1, 8, 8], strides = [1, 1, 1]} : vector<1x8x32xf32> to vector<1x8x8xf32>
    %48 = arith.truncf %47 : vector<1x8x8xf32> to vector<1x8x8xbf16>
    %49 = vector.extract_strided_slice %44 {offsets = [0, 0, 0], sizes = [1, 8, 8], strides = [1, 1, 1]} : vector<1x8x32xf32> to vector<1x8x8xf32>
    %50 = arith.truncf %49 : vector<1x8x8xf32> to vector<1x8x8xbf16>
    "tpu.trace_start"() <{level = 10 : i32, message = "bqe,bke->bqk"}> : () -> ()
    %cst_23 = arith.constant dense<0.000000e+00> : vector<1x8x8xf32>
    %51 = tpu.matmul %48, %50, %cst_23 {dimension_numbers = #tpu.dot_dimension_numbers<[2], [2], [1], [1], [0, 0, 0, 1, 1, 1], [0], [0]>} : vector<1x8x8xbf16>, vector<1x8x8xbf16>, vector<1x8x8xf32> -> vector<1x8x8xf32>
    "tpu.trace_stop"() : () -> ()
    %52 = vector.broadcast %4 : vector<1x1x8xf32> to vector<1x8x8xf32>
    %53 = arith.addf %51, %52 : vector<1x8x8xf32>
    %cst_24 = arith.constant dense<0xFF800000> : vector<1x8xf32>
    %54 = vector.multi_reduction <maximumf>, %53, %cst_24 [2] : vector<1x8x8xf32> to vector<1x8xf32>
    %55 = vector.shape_cast %54 : vector<1x8xf32> to vector<1x8x1xf32>
    %56 = vector.broadcast %55 : vector<1x8x1xf32> to vector<1x8x8xf32>
    %57 = arith.subf %53, %56 : vector<1x8x8xf32>
    %58 = math.exp %57 : vector<1x8x8xf32>
    %cst_25 = arith.constant dense<0.000000e+00> : vector<1x8xf32>
    %59 = vector.multi_reduction <add>, %58, %cst_25 [2] : vector<1x8x8xf32> to vector<1x8xf32>
    %60 = vector.shape_cast %59 : vector<1x8xf32> to vector<1x8x1xf32>
    %61 = tpu.reciprocal %60 {approx = true} : vector<1x8x1xf32> -> vector<1x8x1xf32>
    %62 = vector.broadcast %61 : vector<1x8x1xf32> to vector<1x8x8xf32>
    %63 = arith.mulf %58, %62 : vector<1x8x8xf32>
    %64 = arith.truncf %63 : vector<1x8x8xf32> to vector<1x8x8xbf16>
    %65 = vector.extract_strided_slice %46 {offsets = [0, 0, 0], sizes = [1, 8, 8], strides = [1, 1, 1]} : vector<1x8x32xf32> to vector<1x8x8xf32>
    %66 = arith.truncf %65 : vector<1x8x8xf32> to vector<1x8x8xbf16>
    "tpu.trace_start"() <{level = 10 : i32, message = "bqk,bke->bqe"}> : () -> ()
    %cst_26 = arith.constant dense<0.000000e+00> : vector<1x8x8xf32>
    %67 = tpu.matmul %64, %66, %cst_26 {dimension_numbers = #tpu.dot_dimension_numbers<[2], [1], [1], [2], [0, 0, 0, 1, 1, 2], [0], [0]>} : vector<1x8x8xbf16>, vector<1x8x8xbf16>, vector<1x8x8xf32> -> vector<1x8x8xf32>
    "tpu.trace_stop"() : () -> ()
    %68 = vector.shape_cast %67 : vector<1x8x8xf32> to vector<8x8xf32>
    %69 = vector.extract_strided_slice %42 {offsets = [0, 0, 8], sizes = [1, 8, 8], strides = [1, 1, 1]} : vector<1x8x32xf32> to vector<1x8x8xf32>
    %70 = arith.truncf %69 : vector<1x8x8xf32> to vector<1x8x8xbf16>
    %71 = vector.extract_strided_slice %44 {offsets = [0, 0, 8], sizes = [1, 8, 8], strides = [1, 1, 1]} : vector<1x8x32xf32> to vector<1x8x8xf32>
    %72 = arith.truncf %71 : vector<1x8x8xf32> to vector<1x8x8xbf16>
    "tpu.trace_start"() <{level = 10 : i32, message = "bqe,bke->bqk"}> : () -> ()
    %cst_27 = arith.constant dense<0.000000e+00> : vector<1x8x8xf32>
    %73 = tpu.matmul %70, %72, %cst_27 {dimension_numbers = #tpu.dot_dimension_numbers<[2], [2], [1], [1], [0, 0, 0, 1, 1, 1], [0], [0]>} : vector<1x8x8xbf16>, vector<1x8x8xbf16>, vector<1x8x8xf32> -> vector<1x8x8xf32>
    "tpu.trace_stop"() : () -> ()
    %74 = vector.broadcast %4 : vector<1x1x8xf32> to vector<1x8x8xf32>
    %75 = arith.addf %73, %74 : vector<1x8x8xf32>
    %cst_28 = arith.constant dense<0xFF800000> : vector<1x8xf32>
    %76 = vector.multi_reduction <maximumf>, %75, %cst_28 [2] : vector<1x8x8xf32> to vector<1x8xf32>
    %77 = vector.shape_cast %76 : vector<1x8xf32> to vector<1x8x1xf32>
    %78 = vector.broadcast %77 : vector<1x8x1xf32> to vector<1x8x8xf32>
    %79 = arith.subf %75, %78 : vector<1x8x8xf32>
    %80 = math.exp %79 : vector<1x8x8xf32>
    %cst_29 = arith.constant dense<0.000000e+00> : vector<1x8xf32>
    %81 = vector.multi_reduction <add>, %80, %cst_29 [2] : vector<1x8x8xf32> to vector<1x8xf32>
    %82 = vector.shape_cast %81 : vector<1x8xf32> to vector<1x8x1xf32>
    %83 = tpu.reciprocal %82 {approx = true} : vector<1x8x1xf32> -> vector<1x8x1xf32>
    %84 = vector.broadcast %83 : vector<1x8x1xf32> to vector<1x8x8xf32>
    %85 = arith.mulf %80, %84 : vector<1x8x8xf32>
    %86 = arith.truncf %85 : vector<1x8x8xf32> to vector<1x8x8xbf16>
    %87 = vector.extract_strided_slice %46 {offsets = [0, 0, 8], sizes = [1, 8, 8], strides = [1, 1, 1]} : vector<1x8x32xf32> to vector<1x8x8xf32>
    %88 = arith.truncf %87 : vector<1x8x8xf32> to vector<1x8x8xbf16>
    "tpu.trace_start"() <{level = 10 : i32, message = "bqk,bke->bqe"}> : () -> ()
    %cst_30 = arith.constant dense<0.000000e+00> : vector<1x8x8xf32>
    %89 = tpu.matmul %86, %88, %cst_30 {dimension_numbers = #tpu.dot_dimension_numbers<[2], [1], [1], [2], [0, 0, 0, 1, 1, 2], [0], [0]>} : vector<1x8x8xbf16>, vector<1x8x8xbf16>, vector<1x8x8xf32> -> vector<1x8x8xf32>
    "tpu.trace_stop"() : () -> ()
    %90 = vector.shape_cast %89 : vector<1x8x8xf32> to vector<8x8xf32>
    %91 = vector.extract_strided_slice %42 {offsets = [0, 0, 16], sizes = [1, 8, 8], strides = [1, 1, 1]} : vector<1x8x32xf32> to vector<1x8x8xf32>
    %92 = arith.truncf %91 : vector<1x8x8xf32> to vector<1x8x8xbf16>
    %93 = vector.extract_strided_slice %44 {offsets = [0, 0, 16], sizes = [1, 8, 8], strides = [1, 1, 1]} : vector<1x8x32xf32> to vector<1x8x8xf32>
    %94 = arith.truncf %93 : vector<1x8x8xf32> to vector<1x8x8xbf16>
    "tpu.trace_start"() <{level = 10 : i32, message = "bqe,bke->bqk"}> : () -> ()
    %cst_31 = arith.constant dense<0.000000e+00> : vector<1x8x8xf32>
    %95 = tpu.matmul %92, %94, %cst_31 {dimension_numbers = #tpu.dot_dimension_numbers<[2], [2], [1], [1], [0, 0, 0, 1, 1, 1], [0], [0]>} : vector<1x8x8xbf16>, vector<1x8x8xbf16>, vector<1x8x8xf32> -> vector<1x8x8xf32>
    "tpu.trace_stop"() : () -> ()
    %96 = vector.broadcast %4 : vector<1x1x8xf32> to vector<1x8x8xf32>
    %97 = arith.addf %95, %96 : vector<1x8x8xf32>
    %cst_32 = arith.constant dense<0xFF800000> : vector<1x8xf32>
    %98 = vector.multi_reduction <maximumf>, %97, %cst_32 [2] : vector<1x8x8xf32> to vector<1x8xf32>
    %99 = vector.shape_cast %98 : vector<1x8xf32> to vector<1x8x1xf32>
    %100 = vector.broadcast %99 : vector<1x8x1xf32> to vector<1x8x8xf32>
    %101 = arith.subf %97, %100 : vector<1x8x8xf32>
    %102 = math.exp %101 : vector<1x8x8xf32>
    %cst_33 = arith.constant dense<0.000000e+00> : vector<1x8xf32>
    %103 = vector.multi_reduction <add>, %102, %cst_33 [2] : vector<1x8x8xf32> to vector<1x8xf32>
    %104 = vector.shape_cast %103 : vector<1x8xf32> to vector<1x8x1xf32>
    %105 = tpu.reciprocal %104 {approx = true} : vector<1x8x1xf32> -> vector<1x8x1xf32>
    %106 = vector.broadcast %105 : vector<1x8x1xf32> to vector<1x8x8xf32>
    %107 = arith.mulf %102, %106 : vector<1x8x8xf32>
    %108 = arith.truncf %107 : vector<1x8x8xf32> to vector<1x8x8xbf16>
    %109 = vector.extract_strided_slice %46 {offsets = [0, 0, 16], sizes = [1, 8, 8], strides = [1, 1, 1]} : vector<1x8x32xf32> to vector<1x8x8xf32>
    %110 = arith.truncf %109 : vector<1x8x8xf32> to vector<1x8x8xbf16>
    "tpu.trace_start"() <{level = 10 : i32, message = "bqk,bke->bqe"}> : () -> ()
    %cst_34 = arith.constant dense<0.000000e+00> : vector<1x8x8xf32>
    %111 = tpu.matmul %108, %110, %cst_34 {dimension_numbers = #tpu.dot_dimension_numbers<[2], [1], [1], [2], [0, 0, 0, 1, 1, 2], [0], [0]>} : vector<1x8x8xbf16>, vector<1x8x8xbf16>, vector<1x8x8xf32> -> vector<1x8x8xf32>
    "tpu.trace_stop"() : () -> ()
    %112 = vector.shape_cast %111 : vector<1x8x8xf32> to vector<8x8xf32>
    %113 = vector.extract_strided_slice %42 {offsets = [0, 0, 24], sizes = [1, 8, 8], strides = [1, 1, 1]} : vector<1x8x32xf32> to vector<1x8x8xf32>
    %114 = arith.truncf %113 : vector<1x8x8xf32> to vector<1x8x8xbf16>
    %115 = vector.extract_strided_slice %44 {offsets = [0, 0, 24], sizes = [1, 8, 8], strides = [1, 1, 1]} : vector<1x8x32xf32> to vector<1x8x8xf32>
    %116 = arith.truncf %115 : vector<1x8x8xf32> to vector<1x8x8xbf16>
    "tpu.trace_start"() <{level = 10 : i32, message = "bqe,bke->bqk"}> : () -> ()
    %cst_35 = arith.constant dense<0.000000e+00> : vector<1x8x8xf32>
    %117 = tpu.matmul %114, %116, %cst_35 {dimension_numbers = #tpu.dot_dimension_numbers<[2], [2], [1], [1], [0, 0, 0, 1, 1, 1], [0], [0]>} : vector<1x8x8xbf16>, vector<1x8x8xbf16>, vector<1x8x8xf32> -> vector<1x8x8xf32>
    "tpu.trace_stop"() : () -> ()
    %118 = vector.broadcast %4 : vector<1x1x8xf32> to vector<1x8x8xf32>
    %119 = arith.addf %117, %118 : vector<1x8x8xf32>
    %cst_36 = arith.constant dense<0xFF800000> : vector<1x8xf32>
    %120 = vector.multi_reduction <maximumf>, %119, %cst_36 [2] : vector<1x8x8xf32> to vector<1x8xf32>
    %121 = vector.shape_cast %120 : vector<1x8xf32> to vector<1x8x1xf32>
    %122 = vector.broadcast %121 : vector<1x8x1xf32> to vector<1x8x8xf32>
    %123 = arith.subf %119, %122 : vector<1x8x8xf32>
    %124 = math.exp %123 : vector<1x8x8xf32>
    %cst_37 = arith.constant dense<0.000000e+00> : vector<1x8xf32>
    %125 = vector.multi_reduction <add>, %124, %cst_37 [2] : vector<1x8x8xf32> to vector<1x8xf32>
    %126 = vector.shape_cast %125 : vector<1x8xf32> to vector<1x8x1xf32>
    %127 = tpu.reciprocal %126 {approx = true} : vector<1x8x1xf32> -> vector<1x8x1xf32>
    %128 = vector.broadcast %127 : vector<1x8x1xf32> to vector<1x8x8xf32>
    %129 = arith.mulf %124, %128 : vector<1x8x8xf32>
    %130 = arith.truncf %129 : vector<1x8x8xf32> to vector<1x8x8xbf16>
    %131 = vector.extract_strided_slice %46 {offsets = [0, 0, 24], sizes = [1, 8, 8], strides = [1, 1, 1]} : vector<1x8x32xf32> to vector<1x8x8xf32>
    %132 = arith.truncf %131 : vector<1x8x8xf32> to vector<1x8x8xbf16>
    "tpu.trace_start"() <{level = 10 : i32, message = "bqk,bke->bqe"}> : () -> ()
    %cst_38 = arith.constant dense<0.000000e+00> : vector<1x8x8xf32>
    %133 = tpu.matmul %130, %132, %cst_38 {dimension_numbers = #tpu.dot_dimension_numbers<[2], [1], [1], [2], [0, 0, 0, 1, 1, 2], [0], [0]>} : vector<1x8x8xbf16>, vector<1x8x8xbf16>, vector<1x8x8xf32> -> vector<1x8x8xf32>
    "tpu.trace_stop"() : () -> ()
    %134 = vector.shape_cast %133 : vector<1x8x8xf32> to vector<8x8xf32>
    %135 = tpu.concatenate %68, %90, %112, %134 in 1 : vector<8x8xf32>, vector<8x8xf32>, vector<8x8xf32>, vector<8x8xf32> -> vector<8x32xf32>
    %136 = arith.truncf %135 : vector<8x32xf32> to vector<8x32xbf16>
    %c0_39 = arith.constant 0 : index
    %c0_40 = arith.constant 0 : index
    %c0_41 = arith.constant 0 : index
    %137 = vector.load %arg8[%c0_39, %c0_40, %c0_41] : memref<1x32x32xbf16, #tpu.memory_space<vmem>>, vector<1x32x32xbf16>
    %138 = vector.shape_cast %137 : vector<1x32x32xbf16> to vector<32x32xbf16>
    %cst_42 = arith.constant dense<0.000000e+00> : vector<8x32xf32>
    %139 = tpu.matmul %136, %138, %cst_42 {dimension_numbers = #tpu.dot_dimension_numbers<[1], [0], [0], [1], [0, 0, 1, 1], [], []>} : vector<8x32xbf16>, vector<32x32xbf16>, vector<8x32xf32> -> vector<8x32xf32>
    %c0_43 = arith.constant 0 : index
    %c0_44 = arith.constant 0 : index
    %c0_45 = arith.constant 0 : index
    %140 = vector.load %arg9[%c0_43, %c0_44, %c0_45] : memref<1x1x32xf32, #tpu.memory_space<vmem>>, vector<1x1x32xf32>
    %141 = vector.shape_cast %140 : vector<1x1x32xf32> to vector<1x32xf32>
    %142 = vector.broadcast %141 : vector<1x32xf32> to vector<8x32xf32>
    %143 = arith.addf %139, %142 : vector<8x32xf32>
    %cst_46 = arith.constant 0.000000e+00 : f32
    %144 = vector.broadcast %cst_46 : f32 to vector<8x32xf32>
    %145 = arith.maximumf %143, %144 : vector<8x32xf32>
    %146 = arith.addf %3, %145 : vector<8x32xf32>
    %c0_47 = arith.constant 0 : index
    %c0_48 = arith.constant 0 : index
    %c0_49 = arith.constant 0 : index
    %147 = vector.load %arg10[%c0_47, %c0_48, %c0_49] : memref<1x1x32xf32, #tpu.memory_space<vmem>>, vector<1x1x32xf32>
    %148 = vector.shape_cast %147 : vector<1x1x32xf32> to vector<1x32xf32>
    %c0_50 = arith.constant 0 : index
    %c0_51 = arith.constant 0 : index
    %c0_52 = arith.constant 0 : index
    %149 = vector.load %arg11[%c0_50, %c0_51, %c0_52] : memref<1x1x32xf32, #tpu.memory_space<vmem>>, vector<1x1x32xf32>
    %150 = vector.shape_cast %149 : vector<1x1x32xf32> to vector<1x32xf32>
    %cst_53 = arith.constant dense<0.000000e+00> : vector<8xf32>
    %151 = vector.multi_reduction <add>, %146, %cst_53 [1] : vector<8x32xf32> to vector<8xf32>
    %152 = vector.shape_cast %151 : vector<8xf32> to vector<8x1xf32>
    %cst_54 = arith.constant 3.200000e+01 : f32
    %153 = vector.broadcast %cst_54 : f32 to vector<8x1xf32>
    %154 = arith.divf %152, %153 : vector<8x1xf32>
    %155 = vector.broadcast %154 : vector<8x1xf32> to vector<8x32xf32>
    %156 = arith.subf %146, %155 : vector<8x32xf32>
    %157 = arith.mulf %156, %156 : vector<8x32xf32>
    %cst_55 = arith.constant dense<0.000000e+00> : vector<8xf32>
    %158 = vector.multi_reduction <add>, %157, %cst_55 [1] : vector<8x32xf32> to vector<8xf32>
    %159 = vector.shape_cast %158 : vector<8xf32> to vector<8x1xf32>
    %cst_56 = arith.constant 3.200000e+01 : f32
    %160 = vector.broadcast %cst_56 : f32 to vector<8x1xf32>
    %161 = arith.divf %159, %160 : vector<8x1xf32>
    %162 = vector.broadcast %154 : vector<8x1xf32> to vector<8x32xf32>
    %163 = arith.subf %146, %162 : vector<8x32xf32>
    %cst_57 = arith.constant 9.99999974E-6 : f32
    %164 = vector.broadcast %cst_57 : f32 to vector<8x1xf32>
    %165 = arith.addf %161, %164 : vector<8x1xf32>
    %166 = math.rsqrt %165 : vector<8x1xf32>
    %167 = vector.broadcast %166 : vector<8x1xf32> to vector<8x32xf32>
    %168 = arith.mulf %163, %167 : vector<8x32xf32>
    %169 = vector.broadcast %148 : vector<1x32xf32> to vector<8x32xf32>
    %170 = arith.mulf %168, %169 : vector<8x32xf32>
    %171 = vector.broadcast %150 : vector<1x32xf32> to vector<8x32xf32>
    %172 = arith.addf %170, %171 : vector<8x32xf32>
    %173 = arith.truncf %172 : vector<8x32xf32> to vector<8x32xbf16>
    %c0_58 = arith.constant 0 : index
    %c0_59 = arith.constant 0 : index
    %c0_60 = arith.constant 0 : index
    %174 = vector.load %arg12[%c0_58, %c0_59, %c0_60] : memref<1x32x64xbf16, #tpu.memory_space<vmem>>, vector<1x32x64xbf16>
    %175 = vector.shape_cast %174 : vector<1x32x64xbf16> to vector<32x64xbf16>
    %cst_61 = arith.constant dense<0.000000e+00> : vector<8x64xf32>
    %176 = tpu.matmul %173, %175, %cst_61 {dimension_numbers = #tpu.dot_dimension_numbers<[1], [0], [0], [1], [0, 0, 1, 1], [], []>} : vector<8x32xbf16>, vector<32x64xbf16>, vector<8x64xf32> -> vector<8x64xf32>
    %c0_62 = arith.constant 0 : index
    %c0_63 = arith.constant 0 : index
    %c0_64 = arith.constant 0 : index
    %177 = vector.load %arg13[%c0_62, %c0_63, %c0_64] : memref<1x1x64xf32, #tpu.memory_space<vmem>>, vector<1x1x64xf32>
    %178 = vector.shape_cast %177 : vector<1x1x64xf32> to vector<1x64xf32>
    %179 = vector.broadcast %178 : vector<1x64xf32> to vector<8x64xf32>
    %180 = arith.addf %176, %179 : vector<8x64xf32>
    %cst_65 = arith.constant 0.000000e+00 : f32
    %181 = vector.broadcast %cst_65 : f32 to vector<8x64xf32>
    %182 = arith.maximumf %180, %181 : vector<8x64xf32>
    %183 = arith.truncf %182 : vector<8x64xf32> to vector<8x64xbf16>
    %c0_66 = arith.constant 0 : index
    %c0_67 = arith.constant 0 : index
    %c0_68 = arith.constant 0 : index
    %184 = vector.load %arg14[%c0_66, %c0_67, %c0_68] : memref<1x64x32xbf16, #tpu.memory_space<vmem>>, vector<1x64x32xbf16>
    %185 = vector.shape_cast %184 : vector<1x64x32xbf16> to vector<64x32xbf16>
    %cst_69 = arith.constant dense<0.000000e+00> : vector<8x32xf32>
    %186 = tpu.matmul %183, %185, %cst_69 {dimension_numbers = #tpu.dot_dimension_numbers<[1], [0], [0], [1], [0, 0, 1, 1], [], []>} : vector<8x64xbf16>, vector<64x32xbf16>, vector<8x32xf32> -> vector<8x32xf32>
    %187 = arith.addf %172, %186 : vector<8x32xf32>
    %c0_70 = arith.constant 0 : index
    %c0_71 = arith.constant 0 : index
    %c0_72 = arith.constant 0 : index
    %188 = vector.load %arg15[%c0_70, %c0_71, %c0_72] : memref<1x1x32xf32, #tpu.memory_space<vmem>>, vector<1x1x32xf32>
    %189 = vector.shape_cast %188 : vector<1x1x32xf32> to vector<1x32xf32>
    %190 = vector.broadcast %189 : vector<1x32xf32> to vector<8x32xf32>
    %191 = arith.addf %187, %190 : vector<8x32xf32>
    %c0_73 = arith.constant 0 : index
    %c0_74 = arith.constant 0 : index
    %192 = vector.load %arg21[%c0_73, %c0_74] : memref<8x32xf32, #tpu.memory_space<vmem>>, vector<8x32xf32>
    tpu.vector_store %arg21[%c0_73, %c0_74], %191 {strides = array<i32>} : memref<8x32xf32, #tpu.memory_space<vmem>>, vector<8x32xf32>,
    %c1_i32 = arith.constant 1 : i32
    %193 = arith.cmpi eq, %arg1, %c1_i32 : i32
    %194 = arith.extui %193 : i1 to i32
    %c0_i32_75 = arith.constant 0 : i32
    %195 = arith.cmpi ne, %194, %c0_i32_75 : i32
    scf.if %195 {
      %c0_76 = arith.constant 0 : index
      %c0_77 = arith.constant 0 : index
      %196 = vector.load %arg21[%c0_76, %c0_77] : memref<8x32xf32, #tpu.memory_space<vmem>>, vector<8x32xf32>
      %c0_78 = arith.constant 0 : index
      %c0_79 = arith.constant 0 : index
      %197 = vector.load %arg16[%c0_78, %c0_79] : memref<1x32xf32, #tpu.memory_space<vmem>>, vector<1x32xf32>
      %c0_80 = arith.constant 0 : index
      %c0_81 = arith.constant 0 : index
      %198 = vector.load %arg17[%c0_80, %c0_81] : memref<1x32xf32, #tpu.memory_space<vmem>>, vector<1x32xf32>
      %cst_82 = arith.constant dense<0.000000e+00> : vector<8xf32>
      %199 = vector.multi_reduction <add>, %196, %cst_82 [1] : vector<8x32xf32> to vector<8xf32>
      %200 = vector.shape_cast %199 : vector<8xf32> to vector<8x1xf32>
      %cst_83 = arith.constant 3.200000e+01 : f32
      %201 = vector.broadcast %cst_83 : f32 to vector<8x1xf32>
      %202 = arith.divf %200, %201 : vector<8x1xf32>
      %203 = vector.broadcast %202 : vector<8x1xf32> to vector<8x32xf32>
      %204 = arith.subf %196, %203 : vector<8x32xf32>
      %205 = arith.mulf %204, %204 : vector<8x32xf32>
      %cst_84 = arith.constant dense<0.000000e+00> : vector<8xf32>
      %206 = vector.multi_reduction <add>, %205, %cst_84 [1] : vector<8x32xf32> to vector<8xf32>
      %207 = vector.shape_cast %206 : vector<8xf32> to vector<8x1xf32>
      %cst_85 = arith.constant 3.200000e+01 : f32
      %208 = vector.broadcast %cst_85 : f32 to vector<8x1xf32>
      %209 = arith.divf %207, %208 : vector<8x1xf32>
      %210 = vector.broadcast %202 : vector<8x1xf32> to vector<8x32xf32>
      %211 = arith.subf %196, %210 : vector<8x32xf32>
      %cst_86 = arith.constant 9.99999974E-6 : f32
      %212 = vector.broadcast %cst_86 : f32 to vector<8x1xf32>
      %213 = arith.addf %209, %212 : vector<8x1xf32>
      %214 = math.rsqrt %213 : vector<8x1xf32>
      %215 = vector.broadcast %214 : vector<8x1xf32> to vector<8x32xf32>
      %216 = arith.mulf %211, %215 : vector<8x32xf32>
      %217 = vector.broadcast %197 : vector<1x32xf32> to vector<8x32xf32>
      %218 = arith.mulf %216, %217 : vector<8x32xf32>
      %219 = vector.broadcast %198 : vector<1x32xf32> to vector<8x32xf32>
      %220 = arith.addf %218, %219 : vector<8x32xf32>
      %221 = vector.shape_cast %220 : vector<8x32xf32> to vector<1x8x32xf32>
      %222 = arith.truncf %221 : vector<1x8x32xf32> to vector<1x8x32xbf16>
      %cst_87 = arith.constant 0.000000e+00 : f32
      %223 = vector.broadcast %cst_87 : f32 to vector<1x128xf32>
      %224 = vector.extract_strided_slice %222 {offsets = [0, 0, 0], sizes = [1, 1, 32], strides = [1, 1, 1]} : vector<1x8x32xbf16> to vector<1x1x32xbf16>
      %225 = vector.shape_cast %224 : vector<1x1x32xbf16> to vector<1x32xbf16>
      %c0_88 = arith.constant 0 : index
      %c0_89 = arith.constant 0 : index
      %c0_90 = arith.constant 0 : index
      %226 = vector.load %arg18[%c0_88, %c0_89, %c0_90] : memref<8x32x128xbf16, #tpu.memory_space<vmem>>, vector<1x32x128xbf16>
      %227 = vector.shape_cast %226 : vector<1x32x128xbf16> to vector<32x128xbf16>
      %cst_91 = arith.constant dense<0.000000e+00> : vector<1x128xf32>
      %228 = tpu.matmul %225, %227, %cst_91 {dimension_numbers = #tpu.dot_dimension_numbers<[1], [0], [0], [1], [0, 0, 1, 1], [], []>} : vector<1x32xbf16>, vector<32x128xbf16>, vector<1x128xf32> -> vector<1x128xf32>
      %229 = arith.addf %223, %228 : vector<1x128xf32>
      %230 = vector.extract_strided_slice %222 {offsets = [0, 1, 0], sizes = [1, 1, 32], strides = [1, 1, 1]} : vector<1x8x32xbf16> to vector<1x1x32xbf16>
      %231 = vector.shape_cast %230 : vector<1x1x32xbf16> to vector<1x32xbf16>
      %c1 = arith.constant 1 : index
      %c0_92 = arith.constant 0 : index
      %c0_93 = arith.constant 0 : index
      %232 = vector.load %arg18[%c1, %c0_92, %c0_93] : memref<8x32x128xbf16, #tpu.memory_space<vmem>>, vector<1x32x128xbf16>
      %233 = vector.shape_cast %232 : vector<1x32x128xbf16> to vector<32x128xbf16>
      %cst_94 = arith.constant dense<0.000000e+00> : vector<1x128xf32>
      %234 = tpu.matmul %231, %233, %cst_94 {dimension_numbers = #tpu.dot_dimension_numbers<[1], [0], [0], [1], [0, 0, 1, 1], [], []>} : vector<1x32xbf16>, vector<32x128xbf16>, vector<1x128xf32> -> vector<1x128xf32>
      %235 = arith.addf %229, %234 : vector<1x128xf32>
      %236 = vector.extract_strided_slice %222 {offsets = [0, 2, 0], sizes = [1, 1, 32], strides = [1, 1, 1]} : vector<1x8x32xbf16> to vector<1x1x32xbf16>
      %237 = vector.shape_cast %236 : vector<1x1x32xbf16> to vector<1x32xbf16>
      %c2 = arith.constant 2 : index
      %c0_95 = arith.constant 0 : index
      %c0_96 = arith.constant 0 : index
      %238 = vector.load %arg18[%c2, %c0_95, %c0_96] : memref<8x32x128xbf16, #tpu.memory_space<vmem>>, vector<1x32x128xbf16>
      %239 = vector.shape_cast %238 : vector<1x32x128xbf16> to vector<32x128xbf16>
      %cst_97 = arith.constant dense<0.000000e+00> : vector<1x128xf32>
      %240 = tpu.matmul %237, %239, %cst_97 {dimension_numbers = #tpu.dot_dimension_numbers<[1], [0], [0], [1], [0, 0, 1, 1], [], []>} : vector<1x32xbf16>, vector<32x128xbf16>, vector<1x128xf32> -> vector<1x128xf32>
      %241 = arith.addf %235, %240 : vector<1x128xf32>
      %242 = vector.extract_strided_slice %222 {offsets = [0, 3, 0], sizes = [1, 1, 32], strides = [1, 1, 1]} : vector<1x8x32xbf16> to vector<1x1x32xbf16>
      %243 = vector.shape_cast %242 : vector<1x1x32xbf16> to vector<1x32xbf16>
      %c3 = arith.constant 3 : index
      %c0_98 = arith.constant 0 : index
      %c0_99 = arith.constant 0 : index
      %244 = vector.load %arg18[%c3, %c0_98, %c0_99] : memref<8x32x128xbf16, #tpu.memory_space<vmem>>, vector<1x32x128xbf16>
      %245 = vector.shape_cast %244 : vector<1x32x128xbf16> to vector<32x128xbf16>
      %cst_100 = arith.constant dense<0.000000e+00> : vector<1x128xf32>
      %246 = tpu.matmul %243, %245, %cst_100 {dimension_numbers = #tpu.dot_dimension_numbers<[1], [0], [0], [1], [0, 0, 1, 1], [], []>} : vector<1x32xbf16>, vector<32x128xbf16>, vector<1x128xf32> -> vector<1x128xf32>
      %247 = arith.addf %241, %246 : vector<1x128xf32>
      %248 = vector.extract_strided_slice %222 {offsets = [0, 4, 0], sizes = [1, 1, 32], strides = [1, 1, 1]} : vector<1x8x32xbf16> to vector<1x1x32xbf16>
      %249 = vector.shape_cast %248 : vector<1x1x32xbf16> to vector<1x32xbf16>
      %c4 = arith.constant 4 : index
      %c0_101 = arith.constant 0 : index
      %c0_102 = arith.constant 0 : index
      %250 = vector.load %arg18[%c4, %c0_101, %c0_102] : memref<8x32x128xbf16, #tpu.memory_space<vmem>>, vector<1x32x128xbf16>
      %251 = vector.shape_cast %250 : vector<1x32x128xbf16> to vector<32x128xbf16>
      %cst_103 = arith.constant dense<0.000000e+00> : vector<1x128xf32>
      %252 = tpu.matmul %249, %251, %cst_103 {dimension_numbers = #tpu.dot_dimension_numbers<[1], [0], [0], [1], [0, 0, 1, 1], [], []>} : vector<1x32xbf16>, vector<32x128xbf16>, vector<1x128xf32> -> vector<1x128xf32>
      %253 = arith.addf %247, %252 : vector<1x128xf32>
      %254 = vector.extract_strided_slice %222 {offsets = [0, 5, 0], sizes = [1, 1, 32], strides = [1, 1, 1]} : vector<1x8x32xbf16> to vector<1x1x32xbf16>
      %255 = vector.shape_cast %254 : vector<1x1x32xbf16> to vector<1x32xbf16>
      %c5 = arith.constant 5 : index
      %c0_104 = arith.constant 0 : index
      %c0_105 = arith.constant 0 : index
      %256 = vector.load %arg18[%c5, %c0_104, %c0_105] : memref<8x32x128xbf16, #tpu.memory_space<vmem>>, vector<1x32x128xbf16>
      %257 = vector.shape_cast %256 : vector<1x32x128xbf16> to vector<32x128xbf16>
      %cst_106 = arith.constant dense<0.000000e+00> : vector<1x128xf32>
      %258 = tpu.matmul %255, %257, %cst_106 {dimension_numbers = #tpu.dot_dimension_numbers<[1], [0], [0], [1], [0, 0, 1, 1], [], []>} : vector<1x32xbf16>, vector<32x128xbf16>, vector<1x128xf32> -> vector<1x128xf32>
      %259 = arith.addf %253, %258 : vector<1x128xf32>
      %260 = vector.extract_strided_slice %222 {offsets = [0, 6, 0], sizes = [1, 1, 32], strides = [1, 1, 1]} : vector<1x8x32xbf16> to vector<1x1x32xbf16>
      %261 = vector.shape_cast %260 : vector<1x1x32xbf16> to vector<1x32xbf16>
      %c6 = arith.constant 6 : index
      %c0_107 = arith.constant 0 : index
      %c0_108 = arith.constant 0 : index
      %262 = vector.load %arg18[%c6, %c0_107, %c0_108] : memref<8x32x128xbf16, #tpu.memory_space<vmem>>, vector<1x32x128xbf16>
      %263 = vector.shape_cast %262 : vector<1x32x128xbf16> to vector<32x128xbf16>
      %cst_109 = arith.constant dense<0.000000e+00> : vector<1x128xf32>
      %264 = tpu.matmul %261, %263, %cst_109 {dimension_numbers = #tpu.dot_dimension_numbers<[1], [0], [0], [1], [0, 0, 1, 1], [], []>} : vector<1x32xbf16>, vector<32x128xbf16>, vector<1x128xf32> -> vector<1x128xf32>
      %265 = arith.addf %259, %264 : vector<1x128xf32>
      %266 = vector.extract_strided_slice %222 {offsets = [0, 7, 0], sizes = [1, 1, 32], strides = [1, 1, 1]} : vector<1x8x32xbf16> to vector<1x1x32xbf16>
      %267 = vector.shape_cast %266 : vector<1x1x32xbf16> to vector<1x32xbf16>
      %c7 = arith.constant 7 : index
      %c0_110 = arith.constant 0 : index
      %c0_111 = arith.constant 0 : index
      %268 = vector.load %arg18[%c7, %c0_110, %c0_111] : memref<8x32x128xbf16, #tpu.memory_space<vmem>>, vector<1x32x128xbf16>
      %269 = vector.shape_cast %268 : vector<1x32x128xbf16> to vector<32x128xbf16>
      %cst_112 = arith.constant dense<0.000000e+00> : vector<1x128xf32>
      %270 = tpu.matmul %267, %269, %cst_112 {dimension_numbers = #tpu.dot_dimension_numbers<[1], [0], [0], [1], [0, 0, 1, 1], [], []>} : vector<1x32xbf16>, vector<32x128xbf16>, vector<1x128xf32> -> vector<1x128xf32>
      %271 = arith.addf %265, %270 : vector<1x128xf32>
      %c0_113 = arith.constant 0 : index
      %c0_114 = arith.constant 0 : index
      %272 = vector.load %arg19[%c0_113, %c0_114] : memref<1x128xf32, #tpu.memory_space<vmem>>, vector<1x128xf32>
      %273 = arith.addf %271, %272 : vector<1x128xf32>
      %c0_115 = arith.constant 0 : index
      %c0_116 = arith.constant 0 : index
      %c0_117 = arith.constant 0 : index
      %274 = vector.load %arg20[%c0_115, %c0_116, %c0_117] : memref<1x1x128xf32, #tpu.memory_space<vmem>>, vector<1x1x128xf32>
      %275 = vector.shape_cast %274 : vector<1x1x128xf32> to vector<1x128xf32>
      %276 = vector.shape_cast %273 : vector<1x128xf32> to vector<1x1x128xf32>
      tpu.vector_store %arg20[%c0_115, %c0_116, %c0_117], %276 {strides = array<i32>} : memref<1x1x128xf32, #tpu.memory_space<vmem>>, vector<1x1x128xf32>,
    } else {
    }
    return
  }
  func.func @transform_0(%arg0: i32, %arg1: i32) -> (i32, i32) {
    %c0_i32 = arith.constant 0 : i32
    %c0_i32_0 = arith.constant 0 : i32
    return %arg0, %c0_i32 : i32, i32
  }
  func.func @transform_1(%arg0: i32, %arg1: i32) -> (i32, i32, i32) {
    %c0_i32 = arith.constant 0 : i32
    %c0_i32_0 = arith.constant 0 : i32
    %c0_i32_1 = arith.constant 0 : i32
    return %arg0, %c0_i32, %c0_i32_0 : i32, i32, i32
  }
  func.func @transform_2(%arg0: i32, %arg1: i32) -> (i32, i32, i32) {
    %c0_i32 = arith.constant 0 : i32
    %c0_i32_0 = arith.constant 0 : i32
    %c0_i32_1 = arith.constant 0 : i32
    return %arg1, %c0_i32, %c0_i32_0 : i32, i32, i32
  }
  func.func @transform_3(%arg0: i32, %arg1: i32) -> (i32, i32, i32) {
    %c0_i32 = arith.constant 0 : i32
    %c0_i32_0 = arith.constant 0 : i32
    %c0_i32_1 = arith.constant 0 : i32
    return %arg1, %c0_i32, %c0_i32_0 : i32, i32, i32
  }
  func.func @transform_4(%arg0: i32, %arg1: i32) -> (i32, i32, i32) {
    %c0_i32 = arith.constant 0 : i32
    %c0_i32_0 = arith.constant 0 : i32
    %c0_i32_1 = arith.constant 0 : i32
    return %arg1, %c0_i32, %c0_i32_0 : i32, i32, i32
  }
  func.func @transform_5(%arg0: i32, %arg1: i32) -> (i32, i32, i32) {
    %c0_i32 = arith.constant 0 : i32
    %c0_i32_0 = arith.constant 0 : i32
    %c0_i32_1 = arith.constant 0 : i32
    return %arg1, %c0_i32, %c0_i32_0 : i32, i32, i32
  }
  func.func @transform_6(%arg0: i32, %arg1: i32) -> (i32, i32, i32) {
    %c0_i32 = arith.constant 0 : i32
    %c0_i32_0 = arith.constant 0 : i32
    %c0_i32_1 = arith.constant 0 : i32
    return %arg1, %c0_i32, %c0_i32_0 : i32, i32, i32
  }
  func.func @transform_7(%arg0: i32, %arg1: i32) -> (i32, i32, i32) {
    %c0_i32 = arith.constant 0 : i32
    %c0_i32_0 = arith.constant 0 : i32
    %c0_i32_1 = arith.constant 0 : i32
    return %arg1, %c0_i32, %c0_i32_0 : i32, i32, i32
  }
  func.func @transform_8(%arg0: i32, %arg1: i32) -> (i32, i32, i32) {
    %c0_i32 = arith.constant 0 : i32
    %c0_i32_0 = arith.constant 0 : i32
    %c0_i32_1 = arith.constant 0 : i32
    return %arg1, %c0_i32, %c0_i32_0 : i32, i32, i32
  }
  func.func @transform_9(%arg0: i32, %arg1: i32) -> (i32, i32, i32) {
    %c0_i32 = arith.constant 0 : i32
    %c0_i32_0 = arith.constant 0 : i32
    %c0_i32_1 = arith.constant 0 : i32
    return %arg1, %c0_i32, %c0_i32_0 : i32, i32, i32
  }
  func.func @transform_10(%arg0: i32, %arg1: i32) -> (i32, i32, i32) {
    %c0_i32 = arith.constant 0 : i32
    %c0_i32_0 = arith.constant 0 : i32
    %c0_i32_1 = arith.constant 0 : i32
    return %arg1, %c0_i32, %c0_i32_0 : i32, i32, i32
  }
  func.func @transform_11(%arg0: i32, %arg1: i32) -> (i32, i32, i32) {
    %c0_i32 = arith.constant 0 : i32
    %c0_i32_0 = arith.constant 0 : i32
    %c0_i32_1 = arith.constant 0 : i32
    return %arg1, %c0_i32, %c0_i32_0 : i32, i32, i32
  }
  func.func @transform_12(%arg0: i32, %arg1: i32) -> (i32, i32, i32) {
    %c0_i32 = arith.constant 0 : i32
    %c0_i32_0 = arith.constant 0 : i32
    %c0_i32_1 = arith.constant 0 : i32
    return %arg1, %c0_i32, %c0_i32_0 : i32, i32, i32
  }
  func.func @transform_13(%arg0: i32, %arg1: i32) -> (i32, i32, i32) {
    %c0_i32 = arith.constant 0 : i32
    %c0_i32_0 = arith.constant 0 : i32
    %c0_i32_1 = arith.constant 0 : i32
    return %arg1, %c0_i32, %c0_i32_0 : i32, i32, i32
  }
  func.func @transform_14(%arg0: i32, %arg1: i32) -> (i32, i32) {
    %c0_i32 = arith.constant 0 : i32
    %c0_i32_0 = arith.constant 0 : i32
    %c0_i32_1 = arith.constant 0 : i32
    return %c0_i32, %c0_i32_0 : i32, i32
  }
  func.func @transform_15(%arg0: i32, %arg1: i32) -> (i32, i32) {
    %c0_i32 = arith.constant 0 : i32
    %c0_i32_0 = arith.constant 0 : i32
    %c0_i32_1 = arith.constant 0 : i32
    return %c0_i32, %c0_i32_0 : i32, i32
  }
  func.func @transform_16(%arg0: i32, %arg1: i32) -> (i32, i32, i32) {
    %c0_i32 = arith.constant 0 : i32
    %c0_i32_0 = arith.constant 0 : i32
    %c0_i32_1 = arith.constant 0 : i32
    %c0_i32_2 = arith.constant 0 : i32
    return %c0_i32, %c0_i32_0, %c0_i32_1 : i32, i32, i32
  }
  func.func @transform_17(%arg0: i32, %arg1: i32) -> (i32, i32) {
    %c0_i32 = arith.constant 0 : i32
    %c0_i32_0 = arith.constant 0 : i32
    %c0_i32_1 = arith.constant 0 : i32
    return %c0_i32, %c0_i32_0 : i32, i32
  }
  func.func @transform_18(%arg0: i32, %arg1: i32) -> (i32, i32, i32) {
    %c0_i32 = arith.constant 0 : i32
    %c0_i32_0 = arith.constant 0 : i32
    %c0_i32_1 = arith.constant 0 : i32
    return %arg0, %c0_i32, %c0_i32_0 : i32, i32, i32
  }
}

</mosaic_0001>

<bundles_post_ra>
// kernel: tpu_custom_call.1
= control target key start
LH: loop header
LB: loop body
LE: loop exit
PB: predicated region body
PF: predicated region fallthrough
CT: control target
= control target key end

     0   :  { %s3235_s0 = inlined_call_operand.hbm [shape: f32[16,32], index: 0, kind: input, shape index: {}]   ;;  %s3236_s1 = inlined_call_operand.hbm [shape: f32[2,1,8], index: 1, kind: input, shape index: {}]   ;;  %s3237_s2 = inlined_call_operand.hbm [shape: f32[2,1,32], index: 2, kind: input, shape index: {}]   ;;  %s3238_s3 = inlined_call_operand.hbm [shape: f32[2,1,32], index: 3, kind: input, shape index: {}]   ;;  %s3239_s4 = inlined_call_operand.vmem [shape: bf16[2,32,96], index: 4, kind: input, shape index: {}]   ;;  %s3240_s5 = inlined_call_operand.vmem [shape: f32[2,1,96], index: 5, kind: input, shape index: {}]   ;;  %s3241_s6 = inlined_call_operand.vmem [shape: bf16[2,32,32], index: 6, kind: input, shape index: {}]   ;;  %s3242_s7 = inlined_call_operand.vmem [shape: f32[2,1,32], index: 7, kind: input, shape index: {}]   ;;  %s3243_s8 = inlined_call_operand.vmem [shape: f32[2,1,32], index: 8, kind: input, shape index: {}]   ;;  %s3244_s9 = inlined_call_operand.hbm [shape: f32[2,1,32], index: 9, kind: input, shape index: {}]   ;;  %s3245_s10 = inlined_call_operand.vmem [shape: bf16[2,32,64], index: 10, kind: input, shape index: {}]   ;;  %s3246_s11 = inlined_call_operand.vmem [shape: f32[2,1,64], index: 11, kind: input, shape index: {}]   ;;  %s3247_s12 = inlined_call_operand.vmem [shape: bf16[2,64,32], index: 12, kind: input, shape index: {}]   ;;  %s3248_s13 = inlined_call_operand.vmem [shape: f32[2,1,32], index: 13, kind: input, shape index: {}]   ;;  %s3249_s14 = inlined_call_operand.vmem [shape: f32[1,32], index: 14, kind: input, shape index: {}]   ;;  %s3250_s15 = inlined_call_operand.vmem [shape: f32[1,32], index: 15, kind: input, shape index: {}]   ;;  %s3251_s16 = inlined_call_operand.hbm [shape: bf16[8,32,128], index: 16, kind: input, shape index: {}]   ;;  %s3252_s17 = inlined_call_operand.vmem [shape: f32[1,128], index: 17, kind: input, shape index: {}]   ;;  %s3253_s18 = inlined_call_operand.hbm [shape: f32[2,1,128], index: 18, kind: output, shape index: {}]  }
   0x1   :  { %3269 = sst [smem:[#allocation35_spill]] %s3235_s0 }
   0x2   :  { %3270 = sst [smem:[#allocation36_spill]] %s3236_s1 }
   0x3   :  { %3271 = sst [smem:[#allocation37_spill]] %s3237_s2 }
   0x4   :  { %3272 = sst [smem:[#allocation38_spill]] %s3238_s3 }
   0x5   :  { %3273 = sst [smem:[#allocation39_spill]] %s3239_s4 }
   0x6   :  { %3274 = sst [smem:[#allocation40_spill]] %s3240_s5 }
   0x7   :  { %3275 = sst [smem:[#allocation41_spill]] %s3241_s6 }
   0x8   :  { %3276 = sst [smem:[#allocation42_spill]] %s3242_s7 }
   0x9   :  { %3277 = sst [smem:[#allocation43_spill]] %s3243_s8 }
   0xa   :  { %3278 = sst [smem:[#allocation44_spill]] %s3244_s9 }
   0xb   :  { %3279 = sst [smem:[#allocation45_spill]] %s3245_s10 }
   0xc   :  { %3280 = sst [smem:[#allocation46_spill]] %s3246_s11 }
   0xd   :  { %3281 = sst [smem:[#allocation47_spill]] %s3247_s12 }
   0xe   :  { %3282 = sst [smem:[#allocation48_spill]] %s3248_s13 }
   0xf   :  { %3283 = sst [smem:[#allocation49_spill]] %s3249_s14 }
  0x10   :  { %3284 = sst [smem:[#allocation50_spill]] %s3250_s15 }
  0x11   :  { %3285 = sst [smem:[#allocation51_spill]] %s3251_s16 }
  0x12   :  { %3286 = sst [smem:[#allocation52_spill]] %s3252_s17 }
  0x13   :  { %3287 = sst [smem:[#allocation53_spill]] %s3253_s18 }
  0x14   :  { %23 = vsyncpa [#allocation4], 0 }
  0x15   :  { %25 = vsyncpa [#allocation4 + $0x1], 0 }
  0x16   :  { %26 = vsyncpa [#allocation7], 0 }
  0x17   :  { %28 = vsyncpa [#allocation7 + $0x1], 0 }
  0x18   :  { %29 = vsyncpa [#allocation10], 0 }
  0x19   :  { %31 = vsyncpa [#allocation10 + $0x1], 0 }
  0x1a   :  { %32 = vsyncpa [#allocation13], 0 }
  0x1b   :  { %33 = vsyncpa [#allocation5], 0 }
  0x1c   :  { %35 = vsyncpa [#allocation5 + $0x1], 0  ;;  %s2786_s27 = smov 0   ;;  %s2788_s28 = smov 0  }
  0x1d   :  { %s2790_s29 = smov 0   ;;  %s2792_s30 = smov 0  }
  0x1e   :  { %s2794_s0 = smov 0   ;;  %s2796_s19 = smov 0  }
  0x1f   :  { %s2798_s1 = smov 0   ;;  %s2800_s20 = smov 0  }
  0x20   :  { %s2802_s21 = smov 0   ;;  %s2804_s22 = smov 0  }
  0x21   :  { %s2806_s2 = smov 0  }
  0x22 LB: > { %3288 = sst [smem:[#allocation21_spill]] %s2639_s29  ;;  %s2842_s23 = sadd.s32 4294967295, %s2671_s2   ;;  %s2671_s2 = sphi %s2806_s2, %s41_s2   ;;  %s2667_s22 = sphi %s2804_s22, %s3357_s22   ;;  %s2663_s21 = sphi %s2802_s21, %s3356_s21   ;;  %s2659_s20 = sphi %s2800_s20, %s3355_s20   ;;  %s2655_s1 = sphi %s2798_s1, %s3354_s1   ;;  %s2651_s19 = sphi %s2796_s19, %s3353_s19   ;;  %s2647_s0 = sphi %s2794_s0, %s3361_s0   ;;  %s2643_s30 = sphi %s2792_s30, %s3360_s30   ;;  %s2639_s29 = sphi %s2790_s29, %s3351_s29   ;;  %s2635_s28 = sphi %s2788_s28, %s3359_s28   ;;  %s2631_s27 = sphi %s2786_s27, %s3358_s27  }
  0x23   : > { %3289 = sst [smem:[#allocation22_spill]] %s2643_s30  ;;  %s1993_s24 = sadd.s32 4294967294, %s2671_s2  }
  0x24   : > { %3290 = sst [smem:[#allocation23_spill]] %s2651_s19  ;;  %p67_p0 = scmp.ne.s32.totalorder %s2651_s19, %s2647_s0 }
  0x25   : > { %3291 = sst [smem:[#allocation24_spill]] %s2655_s1  ;;  %p68_p1 = scmp.eq.s32.totalorder %s2671_s2, 0 }
  0x26   : > { %3292 = sst [smem:[#allocation25_spill]] %s2659_s20  ;;  %p73_p2 = scmp.ne.s32.totalorder %s2647_s0, %s2643_s30 }
  0x27   : > { %3293 = sst [smem:[#allocation26_spill]] %s2663_s21  ;;  %p74_p3 = scmp.eq.s32.totalorder %s2842_s23, 0 }
  0x28   : > { %3294 = sst [smem:[#allocation27_spill]] %s2667_s22  ;;  %p69_p4 = por %p68_p1, %p67_p0 }
  0x29   : > { %3295 = sst [smem:[#allocation28_spill]] %s2671_s2  ;;  %p519_p5 = scmp.eq.s32.totalorder %s2842_s23, 3 }
  0x2a   : > { %p2858_p6 = por %p74_p3, %p73_p2  ;;  %p525_p7 = scmp.eq.s32.totalorder %s1993_s24, 3 }
  0x2b   : > { %p2862_p8 = por %p519_p5, %p67_p0  ;;  %p2209_p10 = scmp.lt.s32.totalorder %s2671_s2, 4 }
  0x2c   : > { %p2866_p9 = por %p525_p7, %p73_p2  ;;  %s2872_s30 = sand.u32 1, %s2651_s19  }
  0x2d   : > { %s3297_s25 = scalar_select %p2862_p8, 1, 0 }
  0x2e   : > { %s3299_s26 = scalar_select %p2866_p9, 1, 0 }
  0x2f   : > { %3298 = sst [smem:[#allocation29_spill]] %s3297_s25  ;;  %s3259_s20 = sand.u32 1, %s2671_s2  }
  0x30   : > { %3300 = sst [smem:[#allocation30_spill]] %s3299_s26  ;;  %p2877_p11 = pnand %p2209_p10, %p69_p4 }
  0x31   : > { %s3302_s15 = sld [smem:[#allocation36_spill]]  ;;  %s590_s14 = scalar_lea.vmem [#allocation6], %s2872_s30 }
  0x32   : > { %s597_s12 = sshll.u32 %s590_s14, 4  ;;  %s2888_s11 = scalar_lea.sflag [#allocation7], %s3259_s20  ;;  %s598_s12 = int_to_ptr.vmem [resolvable:$true] %s597_s12 }
  0x33   : > { %s50_s17 = sadd.s32 1, %s2663_s21  ;;  %s112_s25 = sadd.s32 1, %s2639_s29 }
  0x34   : > { %p51_p12 = scmp.ge.s32.totalorder %s50_s17, 2  ;;  %p119_p13 = scmp.ne.s32.totalorder %s2639_s29, %s2635_s28 }
  0x35   : > { %p125_p0 = scmp.ne.s32.totalorder %s2635_s28, %s2631_s27  ;;  %s2900_s14 = sand.u32 1, %s2639_s29  }
  0x36   : > { %s3363_s17 = smov (%p51_p12, %s50_s17), 0  ;;  %p121_p2 = por %p119_p13, %p68_p1 }
  0x37   : > { %s593_s26 = scalar_lea.hbm %s3302_s15, %s2667_s22  ;;  %3303 = sst [smem:[#allocation31_spill]] %s3363_s17 }
  0x38   : > { %s595_s13 = sshll.u32 %s593_s26, 4  ;;  %s3304_s15 = sadd.s32 1, %s2667_s22  ;;  %s596_s13 = int_to_ptr.hbm [resolvable:$true] %s595_s13 }
  0x39   : > { %2194 = dma.hbm_to_vmem [thread:$0]  (!%p2877_p11), %s596_s13, 16, %s598_s12, %s2888_s11  }
  0x3a   : > { %s3365_s15 = smov (!%p51_p12, %s3304_s15), %s2667_s22  ;;  %s109_s26 = ssub.s32 %s2663_s21, %s3363_s17 }
  0x3b   : > { %p55_p4 = scmp.ge.s32.totalorder %s3365_s15, 2  ;;  %p110_p5 = scmp.eq.s32.totalorder %s109_s26, 0 }
  0x3c   : > { %p2913_p7 = por %p125_p0, %p74_p3  ;;  %p2919_p9 = pnand %p2209_p10, %p121_p2 }
  0x3d   : > { %s3367_s15 = smov (%p55_p4, %s3365_s15), 0  ;;  %s3309_s3 = sld [smem:[#allocation38_spill]] }
  0x3e   : > { %3307 = sst [smem:[#allocation32_spill]] %s3367_s15  ;;  %s57_s20 = ssub.s32 %s2667_s22, %s3367_s15 }
  0x3f   : > { %s2926_s27 = scalar_select %p110_p5, %s2639_s29, %s112_s25  }
  0x40   : > { %p58_p1 = scmp.eq.s32.totalorder %s57_s20, 0  ;;  %s3310_s8 = sadd.s32 1, %s2651_s19 }
  0x41   : > { %3308 = sst [smem:[#allocation33_spill]] %s2926_s27  ;;  %s624_s4 = scalar_lea.vmem [#allocation9], %s2900_s14 }
  0x42   : > { %s2937_s7 = scalar_select %p58_p1, %s2651_s19, %s3310_s8  }
  0x43   : > { %s627_s10 = scalar_lea.hbm %s3309_s3, %s2663_s21  ;;  %s631_s5 = sshll.u32 %s624_s4, 4  ;;  %s632_s5 = int_to_ptr.vmem [resolvable:$true] %s631_s5 }
  0x44   : > { %3311 = sst [smem:[#allocation34_spill]] %s2937_s7  ;;  %s629_s6 = sshll.u32 %s627_s10, 4  ;;  %s630_s6 = int_to_ptr.hbm [resolvable:$true] %s629_s6 }
  0x45   : > { %s3312_s1 = sand.u32 1, %s2671_s2   ;;  %p1994_p10 = scmp.ge.s32.totalorder %s2671_s2, 1 }
  0x46   : > { %s2942_s25 = scalar_lea.sflag [#allocation10], %s3312_s1  ;;  %p532_p12 = scmp.lt.s32.totalorder %s2671_s2, 5 }
  0x47   : > { %2200 = dma.hbm_to_vmem [thread:$0]  (!%p2919_p9), %s630_s6, 16, %s632_s5, %s2942_s25  }
  0x48   : > { %s3313_s16 = sld [smem:[#allocation51_spill]]  ;;  %p2952_p13 = pnand %p1994_p10, %p532_p12 }
  0x49   : > { %s2673_s4 = smov [#allocation12]   ;;  %s1997_s5 = sshll.u32 %s2872_s30, 3 }
  0x4a   : > { %s551_s26 = sshll.u32 %s2673_s4, 4  ;;  %p2184_p0 = pneg %p2952_p13  ;;  %s552_s26 = int_to_ptr.vmem [resolvable:$true] %s551_s26 }
  0x4b   : > { %s1998_s6 = sshll.u32 %s2667_s22, 3  ;;  %s3315_s17 = sld [smem:[#allocation35_spill]] }
  0x4c   : > { %p2185_p2 = pnand %p2184_p0, %p74_p3  ;;  %s2675_s15 = smov 4  }
  0x4d   : > { %s572_s7 = scalar_lea.vmem [#allocation3], %s1997_s5  ;;  %s569_s27 = scalar_lea.sflag [#allocation4], %s2872_s30 }
  0x4e   : > { %s549_s8 = sshll.u32 %s3313_s16, 4  ;;  %s2674_s16 = smov 64   ;;  %s550_s8 = int_to_ptr.hbm [resolvable:$true] %s549_s8 }
  0x4f   : > { %2187 = dma.hbm_to_vmem [thread:$0]  (!%p2185_p2), %s550_s8, 2048, %s552_s26, [#allocation13], %s2674_s16, %s2674_s16, %s2675_s15  }
  0x50   : > { %s580_s19 = sshll.u32 %s572_s7, 4  ;;  %s607_s29 = scalar_lea.vmem [#allocation8], %s2900_s14  ;;  %s581_s19 = int_to_ptr.vmem [resolvable:$true] %s580_s19 }
  0x51   : > { %s576_s3 = scalar_lea.hbm %s3315_s17, %s1998_s6  ;;  %s3316_s6 = sld [smem:[#allocation37_spill]] }
  0x52   : > { %s578_s4 = sshll.u32 %s576_s3, 4  ;;  %s614_s2 = sshll.u32 %s607_s29, 4  ;;  %s579_s4 = int_to_ptr.hbm [resolvable:$true] %s578_s4  ;;  %s615_s2 = int_to_ptr.vmem [resolvable:$true] %s614_s2 }
  0x53   : > { %2191 = dma.hbm_to_vmem [thread:$0]  (!%p2877_p11), %s579_s4, 128, %s581_s19, %s569_s27  }
  0x54   : > { %s3317_s9 = sld [smem:[#allocation44_spill]]  ;;  %s675_s8 = scalar_lea.vmem [#allocation11], %s2900_s14 }
  0x55   : > { %s682_s30 = sshll.u32 %s675_s8, 4  ;;  %s2987_s29 = sand.u32 (!%p2952_p13), 1, %s2647_s0   ;;  %s683_s30 = int_to_ptr.vmem [resolvable:$true] %s682_s30 }
  0x56   : > { %s722_s19 = scalar_lea.sflag (!%p2952_p13), [#allocation4], %s2987_s29 }
  0x57   : > { %s610_s20 = scalar_lea.hbm %s3316_s6, %s2663_s21 }
  0x58   : > { %s612_s17 = sshll.u32 %s610_s20, 4  ;;  %719 = sbr.rel (%p2952_p13) target bundleno = 2461 (0x99d), region = 92  ;;  %s613_s17 = int_to_ptr.hbm [resolvable:$true] %s612_s17 }
  0x59   : > { %2197 = dma.hbm_to_vmem [thread:$0]  (!%p2919_p9), %s613_s17, 16, %s615_s2, %s2888_s11  }
  0x5a   : > { %s678_s16 = scalar_lea.hbm %s3317_s9, %s2663_s21  ;;  %s2000_s11 = sshll.u32 (!%p2952_p13), %s2987_s29, 3 }
  0x5b   : > { %s680_s15 = sshll.u32 %s678_s16, 4  ;;  %s2991_s22 = scalar_lea.vmem (!%p2952_p13), [#allocation3], %s2000_s11  ;;  %s681_s15 = int_to_ptr.hbm [resolvable:$true] %s680_s15 }
  0x5c   : > { %2203 = dma.hbm_to_vmem [thread:$0]  (!%p2919_p9), %s681_s15, 16, %s683_s30, %s2942_s25  }
  0x5d   : > { %2606 = dma.done.wait (%p2858_p6), %s722_s19, 128  }
  0x5e   : > { %2608 = vsyncadd (%p2858_p6), %s722_s19, 4294967168  ;;  %s731_s2 = sand.u32 1, %s2842_s23  }
  0x5f   : > { %s732_s24 = scalar_lea.sflag [#allocation7], %s731_s2 }
  0x60   : > { %2610 = dma.done.wait (%p2858_p6), %s732_s24, 16  }
  0x61   : > { %2612 = vsyncadd (%p2858_p6), %s732_s24, 4294967280  ;;  %s3004_s13 = sand.u32 1, %s2635_s28  }
  0x62   : > { %2614 = dma.done.wait (%p2913_p7), %s732_s24, 16  }
  0x63   : > { %2616 = vsyncadd (%p2913_p7), %s732_s24, 4294967280  ;;  %s750_s25 = scalar_lea.sflag [#allocation10], %s731_s2 }
  0x64   : > { %2618 = dma.done.wait (%p2913_p7), %s750_s25, 32  }
  0x65   : > { %2620 = vsyncadd (%p2913_p7), %s750_s25, 4294967264 }
  0x66   : > { %2622 = dma.done.wait (%p74_p3), [#allocation13], 2048  }
  0x67   : > { %2624 = vsyncadd (%p74_p3), [#allocation13], 4294965248  ;;  %s3318_s26 = sld [smem:[#allocation24_spill]] }
  0x68   : > { %s3320_s3 = sld [smem:[#allocation39_spill]] }
  0x69   : > { %s3321_s8 = sld [smem:[#allocation41_spill]] }
  0x6a   : > { %s3323_s14 = sld [smem:[#allocation43_spill]] }
  0x6b   : > { %s3324_s6 = sld [smem:[#allocation45_spill]] }
  0x6c   : > { %s3326_s9 = sld [smem:[#allocation48_spill]] }
  0x6d   : > { %p870_p6 = scmp.lt.s32.totalorder %s3318_s26, 1  ;;  %s3327_s2 = sld [smem:[#allocation47_spill]] }
  0x6e   : > { %p2010_p3 = scmp.ne.s32.totalorder %s3318_s26, 0 }
  0x6f   : > { %s3023_s5 = scalar_select %p870_p6, %s3318_s26, 1 }
  0x71   : > { %s2138_s12 = sshll.u32 %s3023_s5, 4  ;;  %s888_s10 = scalar_lea.vmem %s3323_s14, %s3023_s5 }
  0x72   : > { %s3033_s7 = scalar_lea.vmem %s3320_s3, %s2138_s12  ;;  %s3038_s30 = scalar_lea.vmem %s3321_s8, %s2138_s12 }
  0x73   : > { %s3051_s20 = scalar_lea.vmem %s3324_s6, %s2138_s12  ;;  %s3325_s3 = sld [smem:[#allocation46_spill]] }
  0x74   : > { %s2141_s16 = sshll.u32 %s3023_s5, 5  ;;  %s904_s21 = scalar_lea.vmem %s3326_s9, %s3023_s5 }
  0x75   : > { %s3065_s24 = scalar_lea.vmem %s3327_s2, %s2141_s16  ;;  %s869_s14 = scalar_lea.vmem [#allocation14], %s2987_s29 }
  0x76   : > { %909 = sbr.rel (%p2010_p3) target bundleno = 125 (0x7d), region = 120 }
  0x79   : > { %s896_s27 = scalar_lea.vmem %s3325_s3, %s3023_s5 }
  0x7b   : > { %v910_v0 = vld [vmem:[%s2991_s22] sm:$0xff]  ;;  %vm911_vm0 = vcmask 261120  }
  0x7c   : > { %912 = vst.msk [vmem:[#allocation2] sm:$0xff] %vm911_vm0, %v910_v0 }
  0x7d PF: > { %vm917_vm1 = vcmask 261120   ;;  %v2676_v3 = vmov 32.0   ;;  %v2143_v15 = vld [vmem:[%s3033_s7 + $0x8] sm:$0xff]  ;;  %v2142_v16 = vld [vmem:[%s3033_s7] sm:$0xff]  ;;  %s3328_s9 = scalar_lea.vmem [#allocation8], %s3004_s13  ;;  %s3329_s22 = scalar_lea.vmem [#allocation9], %s3004_s13 }
  0x7e   : > { %2327 = vrcp.f32 %v2676_v3  ;;  %985 = vmatpush.bf16.msra.mxu0 %v2143_v15  ;;  %v2318_v26 = vld [vmem:[%s3328_s9] ss:$0 sm:$0xff]  ;;  %s3330_s12 = sld [smem:[#allocation40_spill]]  ;;  %s2677_s25 = smov 104   ;;  %vm1002_vm6 = vcmask 64512   ;;  %vm1039_vm7 = vcmask 1043456  }
  0x7f   : > { %v2319_v29 = vld [vmem:[%s3329_s22] ss:$0 sm:$0xff]  ;;  %s2678_s4 = smov 120   ;;  %s2679_s1 = smov 96   ;;  %vm1237_vm8 = vcmask 130048   ;;  %vm1239_vm9 = vcmask 195584  }
  0x80   : > { %s2680_s6 = smov 72   ;;  %s2681_s23 = smov 88   ;;  %vm1383_vm13 = vcmask 523264  }
  0x81   : > { %s2682_s17 = smov 112   ;;  %s2683_s3 = smov 80  }
  0x82   : > { %986 = vmatpush.bf16.msra.mxu0 %v2142_v16  ;;  %s3332_s16 = scalar_lea.vmem [#allocation6], %s2987_s29  ;;  %s2684_s15 = smov 64  }
  0x83   : > { %v3070_v1 = vld [vmem:[#allocation2] sm:$0xff]  ;;  %s2685_s8 = smov 56   ;;  %s2686_s11 = smov 40  }
  0x84   : > { %v918_v2 = vsel %vm917_vm1, %v3070_v1, 0.0  ;;  %v2328_v4 = vpop.eup %2327  ;;  %s3331_s7 = scalar_lea.vmem %s3330_s12, %s3023_s5  ;;  %v2321_v52 = vld [vmem:[%s3332_s16] ss:$0 sm:$0xff]  ;;  %s2687_s19 = smov 48  }
  0x85   : > { %919 = vadd.xlane.f32.xlu0 %v918_v2  ;;  %v922_v5 = vmul.f32 32.0, %v2328_v4  ;;  %vm926_vm2 = vweird.f32 %v2328_v4  ;;  %v2320_v33 = vld [vmem:[%s3331_s7] ss:$0 sm:$0xff]  ;;  %s2688_s2 = smov 8   ;;  %s2689_s9 = smov 24  }
  0x86   : > { %s2690_s22 = smov 16   ;;  %s3333_s12 = sld [smem:[#allocation42_spill]] }
  0x87   : > { %v923_v6 = vsub.f32 1.0, %v922_v5 }
  0x89   : > { %v924_v7 = vmul.f32 %v2328_v4, %v923_v6 }
  0x8b   : > { %v925_v8 = vadd.f32 %v2328_v4, %v924_v7 }
  0x8c   : > { %s3334_s7 = scalar_lea.vmem %s3333_s12, %s3023_s5 }
  0x8d   : > { %v3074_v9 = vsel %vm926_vm2, %v2328_v4, %v925_v8 }
  0xf8   : > { %v920_v10 = vpop.xlane.xlu0 %919 }
  0xf9   : > { %v928_v11 = vmul.f32 %v3074_v9, %v920_v10 }
  0xfb   : > { %v929_v12 = vsub.f32 %v3070_v1, %v928_v11 }
  0xfd   : > { %v930_v13 = vmul.f32 %v929_v12, %v929_v12 }
  0xff   : > { %v931_v14 = vsel %vm917_vm1, %v930_v13, 0.0 }
 0x100   : > { %932 = vadd.xlane.f32.xlu0 %v931_v14 }
 0x173   : > { %v933_v17 = vpop.xlane.xlu0 %932 }
 0x174   : > { %v934_v18 = vmul.f32 %v933_v17, %v3074_v9 }
 0x176   : > { %v935_v19 = vadd.f32 1e-05, %v934_v18 }
 0x178   : > { %2329 = vrsqrt.f32 %v935_v19  ;;  %vm942_vm4 = vweird.f32 %v935_v19 }
 0x17e   : > { %v2330_v20 = vpop.eup %2329 }
 0x17f   : > { %v937_v21 = vmul.f32 %v2330_v20, %v935_v19  ;;  %vm943_vm3 = vweird.f32 %v2330_v20 }
 0x180   : > { %vm944_vm5 = vmor %vm942_vm4, %vm943_vm3 }
 0x181   : > { %v938_v22 = vmul.f32 %v2330_v20, %v937_v21 }
 0x183   : > { %v939_v23 = vmul.f32 0.5, %v938_v22 }
 0x185   : > { %v940_v24 = vsub.f32 1.5, %v939_v23 }
 0x187   : > { %v941_v25 = vmul.f32 %v2330_v20, %v940_v24 }
 0x189   : > { %v945_v27 = vsel %vm944_vm5, %v2330_v20, %v941_v25 }
 0x18a   : > { %v946_v28 = vmul.f32 %v945_v27, %v929_v12 }
 0x18c   : > { %v950_v30 = vmul.f32 %v2318_v26, %v946_v28 }
 0x18e   : > { %v954_v31 = vadd.f32 %v2319_v29, %v950_v30 }
 0x190   : > { %v955_v32 = vpack.c.bf16 %v954_v31, %v954_v31 }
 0x192   : > { %2019 = vmatmul.msk.bf16.vlgmr.msra.gmra.mxu0 %vm917_vm1, %v955_v32 }
 0x20f   : > { %v988_v34 = vpop.f32.mrf.mxu0 }
 0x210   : > { %v989_v35 = vadd.f32 %v2320_v33, %v988_v34 }
 0x212   : > { %v992_v36 = vmax.f32 %v989_v35, 0.0 }
 0x214   : > { %v993_v37 = vpack.c.bf16 %v992_v36, %v992_v36 }
 0x216   : > { %v998_v38 = vunpack.c.l.b16 %v993_v37 }
 0x217   : > { %v990_v39 = vpop.f32.mrf.mxu0 }
 0x218   : > { %v999_v40 = vpack.c.b16 %v998_v38, %v998_v38 }
 0x21a   : > { %1168 = vrot.lane.b32.xlu0 %v999_v40, %s2677_s25  ;;  %1056 = vrot.lane.b32.xlu2 %v999_v40, %s2678_s4  ;;  %s3336_s4 = scalar_lea.vmem [#allocation11], %s3004_s13 }
 0x21b   : > { %1000 = vrot.lane.b32.xlu1 %v999_v40, %s2679_s1 }
 0x222   : > { %1170 = vrot.lane.b32.xlu2 %v999_v40, %s2680_s6 }
 0x223   : > { %1058 = vrot.lane.b32.xlu1 %v999_v40, %s2681_s23 }
 0x22a   : > { %1112 = vrot.lane.b32.xlu2 %v999_v40, %s2682_s17 }
 0x22b   : > { %1114 = vrot.lane.b32.xlu1 %v999_v40, %s2683_s3 }
 0x274   : > { %v1057_v41 = vpop.permute.xlu2 %1056 }
 0x27c   : > { %v1171_v44 = vpop.permute.xlu2 %1170 }
 0x27d   : > { %v1176_v47 = vsel %vm1002_vm6, %v1171_v44, 0 }
 0x284   : > { %v1113_v50 = vpop.permute.xlu2 %1112 }
 0x28c   : > { %v1169_v51 = vpop.permute.xlu0 %1168 }
 0x28d   : > { %v1001_v42 = vpop.permute.xlu1 %1000 }
 0x28e   : > { %v1007_v43 = vsel %vm1002_vm6, %v1001_v42, 0 }
 0x28f   : > { %1016 = vmatpush.bf16.xpose.msra.mxu1 %v1007_v43 }
 0x295   : > { %v1059_v45 = vpop.permute.xlu1 %1058 }
 0x296   : > { %2020 = vmatmul.msk.bf16.vlgmr.msra.gmra.mxu1 %vm1002_vm6, %v993_v37  ;;  %v1064_v46 = vsel %vm1002_vm6, %v1059_v45, 0 }
 0x297   : > { %1073 = vmatpush.bf16.xpose.msra.mxu3 %v1064_v46 }
 0x29d   : > { %v1115_v48 = vpop.permute.xlu1 %1114 }
 0x29e   : > { %2022 = vmatmul.msk.bf16.vlgmr.msra.gmra.mxu3 %vm1002_vm6, %v1057_v41  ;;  %v1120_v49 = vsel %vm1002_vm6, %v1115_v48, 0 }
 0x29f   : > { %1185 = vmatpush.bf16.xpose.msrb.mxu3 %v1176_v47  ;;  %1129 = vmatpush.bf16.xpose.msrb.mxu0 %v1120_v49 }
 0x2a6   : > { %2024 = vmatmul.msk.bf16.vlgmr.msrb.gmra.mxu0 %vm1002_vm6, %v1113_v50 }
 0x2ae   : > { %2026 = vmatmul.msk.bf16.vlgmr.msrb.gmra.mxu3 %vm1002_vm6, %v1169_v51 }
 0x313   : > { %v1018_v53 = vpop.f32.mrf.mxu1 }
 0x314   : > { %v1019_v54 = vadd.f32 %v2321_v52, %v1018_v53 }
 0x316   : > { %v1022_v55 = vsel %vm1002_vm6, %v1019_v54, -inf }
 0x317   : > { %1023 = vmax.xlane.f32.xlu1 %v1022_v55 }
 0x31b   : > { %v1020_v56 = vpop.f32.mrf.mxu1 }
 0x321   : > { %v1075_v57 = vpop.f32.mrf.mxu3 }
 0x322   : > { %v1076_v58 = vadd.f32 %v2321_v52, %v1075_v57 }
 0x323   : > { %v1131_v59 = vpop.f32.mrf.mxu0 }
 0x324   : > { %v1079_v60 = vsel %vm1002_vm6, %v1076_v58, -inf  ;;  %v1132_v61 = vadd.f32 %v2321_v52, %v1131_v59  ;;  %v2145_v59 = vld [vmem:[%s3038_s30 + $0x8] sm:$0xff] }
 0x325   : > { %1080 = vmax.xlane.f32.xlu2 %v1079_v60  ;;  %1271 = vmatpush.bf16.msra.mxu0 %v2145_v59  ;;  %v2144_v60 = vld [vmem:[%s3038_s30] sm:$0xff] }
 0x326   : > { %v1135_v0 = vsel %vm1002_vm6, %v1132_v61, -inf }
 0x329   : > { %v1077_v62 = vpop.f32.mrf.mxu3  ;;  %1272 = vmatpush.bf16.msra.mxu0 %v2144_v60 }
 0x32b   : > { %v1133_v63 = vpop.f32.mrf.mxu0 }
 0x32d   : > { %1136 = vmax.xlane.f32.xlu2 %v1135_v0 }
 0x331   : > { %v1187_v2 = vpop.f32.mrf.mxu3 }
 0x332   : > { %v1188_v3 = vadd.f32 %v2321_v52, %v1187_v2 }
 0x334   : > { %v1191_v4 = vsel %vm1002_vm6, %v1188_v3, -inf }
 0x335   : > { %1192 = vmax.xlane.f32.xlu0 %v1191_v4 }
 0x339   : > { %v1189_v5 = vpop.f32.mrf.mxu3 }
 0x33a   : > { %v2322_v5 = vld [vmem:[%s3334_s7] ss:$0 sm:$0xff] }
 0x345   : > { %1034 = vrot.lane.b32.xlu2 %v999_v40, %s2684_s15 }
 0x349   : > { %1091 = vrot.lane.b32.xlu0 %v999_v40, %s2685_s8 }
 0x34d   : > { %1203 = vrot.lane.b32.xlu2 %v999_v40, %s2686_s11 }
 0x351   : > { %1147 = vrot.lane.b32.xlu0 %v999_v40, %s2687_s19 }
 0x38a   : > { %v1024_v6 = vpop.xlane.xlu1 %1023 }
 0x38b   : > { %v1025_v7 = vsub.f32 %v1019_v54, %v1024_v6 }
 0x38d   : > { %v1026_v8 = vmul.f32 1.442695, %v1025_v7 }
 0x38f   : > { %2331 = vpow2.f32 %v1026_v8 }
 0x395   : > { %v2332_v10 = vpop.eup %2331 }
 0x396   : > { %v1028_v11 = vsel %vm1002_vm6, %v2332_v10, 0.0 }
 0x397   : > { %1029 = vadd.xlane.f32.xlu1 %v1028_v11 }
 0x398   : > { %v1081_v12 = vpop.xlane.xlu2 %1080 }
 0x399   : > { %v1082_v13 = vsub.f32 %v1076_v58, %v1081_v12 }
 0x39b   : > { %v1083_v14 = vmul.f32 1.442695, %v1082_v13 }
 0x39d   : > { %2333 = vpow2.f32 %v1083_v14 }
 0x3a0   : > { %v1137_v15 = vpop.xlane.xlu2 %1136 }
 0x3a1   : > { %v1138_v22 = vsub.f32 %v1132_v61, %v1137_v15 }
 0x3a3   : > { %v2334_v16 = vpop.eup %2333  ;;  %v1139_v24 = vmul.f32 1.442695, %v1138_v22  ;;  %v2150_v22 = vld [vmem:[%s3065_s24 + $0x10] sm:$0xff] }
 0x3a4   : > { %v1085_v17 = vsel %vm1002_vm6, %v2334_v16, 0.0 }
 0x3a5   : > { %1086 = vadd.xlane.f32.xlu1 %v1085_v17 }
 0x3a8   : > { %v1193_v18 = vpop.xlane.xlu0 %1192  ;;  %v1035_v19 = vpop.permute.xlu2 %1034 }
 0x3a9   : > { %v1194_v20 = vsub.f32 %v1188_v3, %v1193_v18  ;;  %v1041_v21 = vsel %vm1039_vm7, %v1035_v19, 0  ;;  %v2147_v18 = vld [vmem:[%s3051_s20 + $0x8] sm:$0xff]  ;;  %v2146_v19 = vld [vmem:[%s3051_s20] sm:$0xff] }
 0x3aa   : > { %1050 = vmatpush.bf16.msra.mxu2 %v1041_v21 }
 0x3ab   : > { %v1195_v23 = vmul.f32 1.442695, %v1194_v20  ;;  %v2151_v20 = vld [vmem:[%s3065_s24 + $0x18] sm:$0xff] }
 0x3ac   : > { %1391 = vmatpush.bf16.msra.mxu3 %v2151_v20 }
 0x3ad   : > { %2335 = vpow2.f32 %v1195_v23 }
 0x3ae   : > { %2337 = vpow2.f32 %v1139_v24  ;;  %v2149_v24 = vld [vmem:[%s3065_s24 + $0x8] sm:$0xff] }
 0x3b0   : > { %v1204_v36 = vpop.permute.xlu2 %1203  ;;  %1392 = vmatpush.bf16.msra.mxu3 %v2150_v22 }
 0x3b1   : > { %v1209_v38 = vsel %vm1039_vm7, %v1204_v36, 0 }
 0x3b3   : > { %v2336_v25 = vpop.eup %2335 }
 0x3b4   : > { %v1197_v26 = vsel %vm1002_vm6, %v2336_v25, 0.0  ;;  %v2338_v27 = vpop.eup %2337  ;;  %1393 = vmatpush.bf16.msra.mxu3 %v2149_v24 }
 0x3b5   : > { %1198 = vadd.xlane.f32.xlu1 %v1197_v26  ;;  %v1141_v30 = vsel %vm1002_vm6, %v2338_v27, 0.0 }
 0x3bb   : > { %v1092_v28 = vpop.permute.xlu0 %1091 }
 0x3bc   : > { %v1097_v29 = vsel %vm1039_vm7, %v1092_v28, 0 }
 0x3bd   : > { %1106 = vmatpush.bf16.msrb.mxu2 %v1097_v29  ;;  %1142 = vadd.xlane.f32.xlu1 %v1141_v30 }
 0x3c3   : > { %v1148_v31 = vpop.permute.xlu0 %1147 }
 0x3c4   : > { %v1153_v32 = vsel %vm1039_vm7, %v1148_v31, 0  ;;  %v2323_v31 = vld [vmem:[%s888_s10] ss:$0 sm:$0xff] }
 0x3c5   : > { %1162 = vmatpush.bf16.msrb.mxu1 %v1153_v32 }
 0x3c9   : > { %1342 = vmatpush.bf16.msra.mxu1 %v2147_v18 }
 0x3cd   : > { %1343 = vmatpush.bf16.msra.mxu1 %v2146_v19 }
 0x40a   : > { %v1030_v33 = vpop.xlane.xlu1 %1029 }
 0x40b   : > { %2339 = vrcp.f32 %v1030_v33  ;;  %v2324_v33 = vld [vmem:[%s3336_s4] ss:$0 sm:$0xff] }
 0x411   : > { %v2340_v34 = vpop.eup %2339 }
 0x412   : > { %v1032_v35 = vmul.f32 %v2340_v34, %v2332_v10 }
 0x414   : > { %v1033_v37 = vpack.c.bf16 %v1032_v35, %v1032_v35 }
 0x416   : > { %2021 = vmatmul.msk.bf16.vlgmr.msra.gmra.mxu2 %vm1002_vm6, %v1033_v37 }
 0x417   : > { %1218 = vmatpush.bf16.msra.mxu2 %v1209_v38  ;;  %v2148_v38 = vld [vmem:[%s3065_s24] sm:$0xff]  ;;  %s3339_s24 = sld [smem:[#allocation24_spill]] }
 0x418   : > { %v1087_v39 = vpop.xlane.xlu1 %1086  ;;  %1394 = vmatpush.bf16.msra.mxu3 %v2148_v38 }
 0x419   : > { %2341 = vrcp.f32 %v1087_v39  ;;  %v2325_v39 = vld [vmem:[%s896_s27] ss:$0 sm:$0xff] }
 0x41d   : > { %p2063_p9 = scmp.ne.s32.totalorder %s3339_s24, 1 }
 0x41e   : > { %s3340_s5 = sld [smem:[#allocation49_spill]] (!%p2063_p9) }
 0x41f   : > { %v2342_v40 = vpop.eup %2341  ;;  %s3341_s15 = sld [smem:[#allocation50_spill]] (!%p2063_p9) }
 0x420   : > { %v1089_v41 = vmul.f32 %v2342_v40, %v2334_v16  ;;  %s3342_s19 = sld [smem:[#allocation52_spill]] (!%p2063_p9) }
 0x422   : > { %v1090_v42 = vpack.c.bf16 %v1089_v41, %v1089_v41 }
 0x426   : > { %2023 = vmatmul.msk.bf16.vlgmr.msrb.gmra.mxu2 %vm1002_vm6, %v1090_v42 }
 0x428   : > { %v1199_v43 = vpop.xlane.xlu1 %1198 }
 0x429   : > { %2343 = vrcp.f32 %v1199_v43 }
 0x42f   : > { %v2344_v44 = vpop.eup %2343 }
 0x430   : > { %v1201_v45 = vmul.f32 %v2344_v44, %v2336_v25  ;;  %v1143_v46 = vpop.xlane.xlu1 %1142 }
 0x431   : > { %2345 = vrcp.f32 %v1143_v46 }
 0x432   : > { %v1202_v47 = vpack.c.bf16 %v1201_v45, %v1201_v45  ;;  %v2326_v45 = vld [vmem:[%s904_s21] ss:$0 sm:$0xff] }
 0x436   : > { %2027 = vmatmul.msk.bf16.vlgmr.msra.gmra.mxu2 %vm1002_vm6, %v1202_v47 }
 0x437   : > { %v2346_v48 = vpop.eup %2345 }
 0x438   : > { %v1145_v49 = vmul.f32 %v2346_v48, %v2338_v27 }
 0x43a   : > { %v1146_v50 = vpack.c.bf16 %v1145_v49, %v1145_v49 }
 0x43c   : > { %2025 = vmatmul.msk.bf16.vlgmr.msrb.gmra.mxu1 %vm1002_vm6, %v1146_v50 }
 0x499   : > { %v1052_v51 = vpop.f32.mrf.mxu2 }
 0x4a1   : > { %v1054_v52 = vpop.f32.mrf.mxu2 }
 0x4a9   : > { %v1108_v53 = vpop.f32.mrf.mxu2 }
 0x4aa   : > { %1225 = vrot.lane.b32.xlu1 %v1108_v53, %s2688_s2 }
 0x4b1   : > { %v1110_v54 = vpop.f32.mrf.mxu2 }
 0x4b9   : > { %v1164_v55 = vpop.f32.mrf.mxu1  ;;  %v1220_v56 = vpop.f32.mrf.mxu2 }
 0x4ba   : > { %1233 = vrot.lane.b32.xlu0 %v1220_v56, %s2689_s9  ;;  %1229 = vrot.lane.b32.xlu2 %v1164_v55, %s2690_s22 }
 0x4c1   : > { %v1166_v57 = vpop.f32.mrf.mxu1  ;;  %v1222_v58 = vpop.f32.mrf.mxu2 }
 0x514   : > { %v1230_v63 = vpop.permute.xlu2 %1229 }
 0x51c   : > { %v1226_v61 = vpop.permute.xlu1 %1225 }
 0x51d   : > { %v1236_v62 = vsel %vm1002_vm6, %v1052_v51, %v1226_v61 }
 0x51e   : > { %v1238_v2 = vsel %vm1237_vm8, %v1236_v62, %v1230_v63 }
 0x52c   : > { %v1234_v0 = vpop.permute.xlu0 %1233 }
 0x52d   : > { %v1240_v3 = vsel %vm1239_vm9, %v1238_v2, %v1234_v0 }
 0x52e   : > { %v1241_v4 = vpack.c.bf16 %v1240_v3, %v1240_v3 }
 0x530   : > { %2036 = vmatmul.msk.bf16.vlgmr.msra.gmra.mxu0 %vm917_vm1, %v1241_v4 }
 0x5ad   : > { %v1274_v6 = vpop.f32.mrf.mxu0 }
 0x5ae   : > { %v1275_v7 = vadd.f32 %v2322_v5, %v1274_v6 }
 0x5b0   : > { %v1278_v8 = vmax.f32 %v1275_v7, 0.0 }
 0x5b2   : > { %v1279_v10 = vadd.f32 %v1278_v8, %v3070_v1 }
 0x5b4   : > { %v1282_v11 = vsel %vm917_vm1, %v1279_v10, 0.0 }
 0x5b5   : > { %v1276_v12 = vpop.f32.mrf.mxu0  ;;  %1283 = vadd.xlane.f32.xlu2 %v1282_v11 }
 0x628   : > { %v1284_v13 = vpop.xlane.xlu2 %1283 }
 0x629   : > { %v1285_v14 = vmul.f32 %v1284_v13, %v3074_v9 }
 0x62b   : > { %v1286_v15 = vsub.f32 %v1279_v10, %v1285_v14 }
 0x62d   : > { %v1287_v16 = vmul.f32 %v1286_v15, %v1286_v15 }
 0x62f   : > { %v1288_v17 = vsel %vm917_vm1, %v1287_v16, 0.0 }
 0x630   : > { %1289 = vadd.xlane.f32.xlu0 %v1288_v17 }
 0x6a3   : > { %v1290_v1 = vpop.xlane.xlu0 %1289 }
 0x6a4   : > { %v1291_v21 = vmul.f32 %v1290_v1, %v3074_v9 }
 0x6a6   : > { %v1292_v23 = vadd.f32 1e-05, %v1291_v21 }
 0x6a8   : > { %2347 = vrsqrt.f32 %v1292_v23  ;;  %vm1299_vm11 = vweird.f32 %v1292_v23 }
 0x6ae   : > { %v2348_v25 = vpop.eup %2347 }
 0x6af   : > { %v1294_v26 = vmul.f32 %v2348_v25, %v1292_v23  ;;  %vm1300_vm10 = vweird.f32 %v2348_v25 }
 0x6b0   : > { %vm1301_vm12 = vmor %vm1299_vm11, %vm1300_vm10 }
 0x6b1   : > { %v1295_v27 = vmul.f32 %v2348_v25, %v1294_v26 }
 0x6b3   : > { %v1296_v28 = vmul.f32 0.5, %v1295_v27 }
 0x6b5   : > { %v1297_v29 = vsub.f32 1.5, %v1296_v28 }
 0x6b7   : > { %v1298_v30 = vmul.f32 %v2348_v25, %v1297_v29 }
 0x6b9   : > { %v1302_v32 = vsel %vm1301_vm12, %v2348_v25, %v1298_v30 }
 0x6ba   : > { %v1303_v34 = vmul.f32 %v1302_v32, %v1286_v15 }
 0x6bc   : > { %v1307_v35 = vmul.f32 %v2323_v31, %v1303_v34 }
 0x6be   : > { %v1311_v36 = vadd.f32 %v2324_v33, %v1307_v35 }
 0x6c0   : > { %v1312_v37 = vpack.c.bf16 %v1311_v36, %v1311_v36 }
 0x6c2   : > { %2045 = vmatmul.msk.bf16.vlgmr.msra.gmra.mxu1 %vm917_vm1, %v1312_v37 }
 0x73f   : > { %v1345_v40 = vpop.f32.mrf.mxu1 }
 0x740   : > { %v1346_v41 = vadd.f32 %v2325_v39, %v1345_v40 }
 0x742   : > { %v1349_v42 = vmax.f32 %v1346_v41, 0.0 }
 0x744   : > { %v1350_v43 = vpack.c.bf16 %v1349_v42, %v1349_v42 }
 0x746   : > { %2062 = vmatmul.msk.bf16.vlgmr.msra.gmra.mxu3 %vm1383_vm13, %v1350_v43 }
 0x747   : > { %v1347_v44 = vpop.f32.mrf.mxu1 }
 0x7c9   : > { %v1396_v46 = vpop.f32.mrf.mxu3 }
 0x7ca   : > { %v1400_v47 = vadd.f32 %v1396_v46, %v1311_v36 }
 0x7cc   : > { %v1405_v48 = vadd.f32 %v2326_v45, %v1400_v47 }
 0x7cd   : > { %1410 = sbr.rel (%p2063_p9) target bundleno = 2440 (0x988), region = 124 }
 0x7ce   : > { %1406 = vst.msk [vmem:[#allocation2] sm:$0xff] %vm917_vm1, %v1405_v48 }
 0x7d1   : > { %v1398_v49 = vpop.f32.mrf.mxu3 }
 0x7d2   : > { %v2153_v57 = vld [vmem:[#allocation12 + $0x8] sm:$0xff]  ;;  %v2155_v58 = vld [vmem:[#allocation12 + $0x18] sm:$0xff]  ;;  %v2152_v60 = vld [vmem:[#allocation12] sm:$0xff] }
 0x7d3   : > { %v2157_v59 = vld [vmem:[#allocation12 + $0x28] sm:$0xff]  ;;  %1509 = vmatpush.bf16.msra.mxu1 %v2153_v57  ;;  %1481 = vmatpush.bf16.msra.mxu0 %v2155_v58  ;;  %v2159_v61 = vld [vmem:[#allocation12 + $0x38] sm:$0xff]  ;;  %v2154_v63 = vld [vmem:[#allocation12 + $0x10] sm:$0xff] }
 0x7d4   : > { %1543 = vmatpush.bf16.msra.mxu2 %v2157_v59  ;;  %1578 = vmatpush.bf16.msra.mxu3 %v2159_v61  ;;  %v2156_v0 = vld [vmem:[#allocation12 + $0x20] sm:$0xff]  ;;  %v2158_v3 = vld [vmem:[#allocation12 + $0x30] sm:$0xff]  ;;  %v2163_v5 = vld [vmem:[#allocation12 + $0x58] sm:$0xff] }
 0x7d5   : > { %v1411_v50 = vld [vmem:[#allocation2] sm:$0xff]  ;;  %v2165_v6 = vld [vmem:[#allocation12 + $0x68] sm:$0xff]  ;;  %v2167_v7 = vld [vmem:[#allocation12 + $0x78] sm:$0xff] }
 0x7d6   : > { %v1414_v51 = vsel %vm917_vm1, %v1411_v50, 0.0  ;;  %v2161_v8 = vld [vmem:[#allocation12 + $0x48] sm:$0xff]  ;;  %v2162_v10 = vld [vmem:[#allocation12 + $0x50] sm:$0xff]  ;;  %v2160_v15 = vld [vmem:[#allocation12 + $0x40] sm:$0xff] }
 0x7d7   : > { %1415 = vadd.xlane.f32.xlu0 %v1414_v51  ;;  %1510 = vmatpush.bf16.msra.mxu1 %v2152_v60  ;;  %v2166_v14 = vld [vmem:[#allocation12 + $0x70] sm:$0xff]  ;;  %v2349_v19 = vld [vmem:[%s3340_s5] ss:$0 sm:$0xff] }
 0x7d8   : > { %1482 = vmatpush.bf16.msra.mxu0 %v2154_v63  ;;  %1544 = vmatpush.bf16.msra.mxu2 %v2156_v0  ;;  %v2350_v21 = vld [vmem:[%s3341_s15] ss:$0 sm:$0xff] }
 0x7d9   : > { %1579 = vmatpush.bf16.msra.mxu3 %v2158_v3 }
 0x7db   : > { %1648 = vmatpush.bf16.msrb.mxu1 %v2163_v5 }
 0x7dc   : > { %1683 = vmatpush.bf16.msrb.mxu2 %v2165_v6  ;;  %1613 = vmatpush.bf16.msrb.mxu0 %v2161_v8 }
 0x7dd   : > { %1718 = vmatpush.bf16.msrb.mxu3 %v2167_v7 }
 0x7df   : > { %1649 = vmatpush.bf16.msrb.mxu1 %v2162_v10 }
 0x7e0   : > { %1614 = vmatpush.bf16.msrb.mxu0 %v2160_v15 }
 0x7e1   : > { %1719 = vmatpush.bf16.msrb.mxu3 %v2166_v14 }
 0x84a   : > { %v1416_v52 = vpop.xlane.xlu0 %1415 }
 0x84b   : > { %v1417_v53 = vmul.f32 %v1416_v52, %v3074_v9 }
 0x84d   : > { %v1418_v54 = vsub.f32 %v1411_v50, %v1417_v53 }
 0x84f   : > { %v1419_v55 = vmul.f32 %v1418_v54, %v1418_v54 }
 0x851   : > { %v1420_v56 = vsel %vm917_vm1, %v1419_v55, 0.0 }
 0x852   : > { %1421 = vadd.xlane.f32.xlu0 %v1420_v56 }
 0x8c5   : > { %v1422_v62 = vpop.xlane.xlu0 %1421 }
 0x8c6   : > { %v1423_v2 = vmul.f32 %v1422_v62, %v3074_v9  ;;  %v2164_v9 = vld [vmem:[#allocation12 + $0x60] sm:$0xff] }
 0x8c7   : > { %1684 = vmatpush.bf16.msrb.mxu2 %v2164_v9 }
 0x8c8   : > { %v1424_v4 = vadd.f32 1e-05, %v1423_v2 }
 0x8ca   : > { %2351 = vrsqrt.f32 %v1424_v4  ;;  %vm1431_vm15 = vweird.f32 %v1424_v4 }
 0x8d0   : > { %v2352_v11 = vpop.eup %2351 }
 0x8d1   : > { %v1426_v12 = vmul.f32 %v2352_v11, %v1424_v4  ;;  %vm1432_vm14 = vweird.f32 %v2352_v11 }
 0x8d2   : > { %vm1433_vm0 = vmor %vm1431_vm15, %vm1432_vm14 }
 0x8d3   : > { %v1427_v13 = vmul.f32 %v2352_v11, %v1426_v12 }
 0x8d5   : > { %v1428_v16 = vmul.f32 0.5, %v1427_v13 }
 0x8d7   : > { %v1429_v17 = vsub.f32 1.5, %v1428_v16 }
 0x8d9   : > { %v1430_v18 = vmul.f32 %v2352_v11, %v1429_v17 }
 0x8db   : > { %v1434_v20 = vsel %vm1433_vm0, %v2352_v11, %v1430_v18 }
 0x8dc   : > { %v1435_v1 = vmul.f32 %v1434_v20, %v1418_v54  ;;  %v1726_v54 = vld [vmem:[%s3342_s19] sm:$0x1] }
 0x8de   : > { %v1439_v22 = vmul.f32 %v2349_v19, %v1435_v1 }
 0x8e0   : > { %v1443_v23 = vadd.f32 %v2350_v21, %v1439_v22 }
 0x8e2   : > { %v1444_v24 = vpack.c.bf16 %v1443_v23, %v1443_v23 }
 0x8e4   : > { %v1455_v25 = vunpack.c.l.b16 %v1444_v24  ;;  %2081 = vmatmul.msk.bf16.vlgmr.msra.gmra.mxu1 %vm917_vm1, %v1444_v24 }
 0x8e6   : > { %v1456_v26 = vpack.c.b16 %v1455_v25, %v1455_v25 }
 0x8e8   : > { %v1458_v27 = vshrl.u32 %v1456_v26, 16  ;;  %v1521_v28 = vrot.slane %v1456_v26, 1  ;;  %v1591_v31 = vrot.slane %v1456_v26, 2  ;;  %v1661_v32 = vrot.slane %v1456_v26, 3 }
 0x8ea   : > { %2072 = vmatmul.msk.bf16.vlgmr.msra.gmra.mxu0 %vm917_vm1, %v1458_v27  ;;  %2090 = vmatmul.msk.bf16.vlgmr.msra.gmra.mxu2 %vm917_vm1, %v1521_v28  ;;  %v1556_v29 = vrot.slane %v1458_v27, 1  ;;  %v1626_v30 = vrot.slane %v1458_v27, 2  ;;  %v1696_v33 = vrot.slane %v1458_v27, 3 }
 0x8ec   : > { %2099 = vmatmul.msk.bf16.vlgmr.msra.gmra.mxu3 %vm917_vm1, %v1556_v29 }
 0x8f4   : > { %2117 = vmatmul.msk.bf16.vlgmr.msrb.gmra.mxu1 %vm917_vm1, %v1626_v30 }
 0x8fa   : > { %2108 = vmatmul.msk.bf16.vlgmr.msrb.gmra.mxu0 %vm917_vm1, %v1591_v31  ;;  %2126 = vmatmul.msk.bf16.vlgmr.msrb.gmra.mxu2 %vm917_vm1, %v1661_v32 }
 0x8fc   : > { %2135 = vmatmul.msk.bf16.vlgmr.msrb.gmra.mxu3 %vm917_vm1, %v1696_v33 }
 0x961   : > { %v1512_v34 = vpop.f32.mrf.mxu1 }
 0x967   : > { %v1484_v35 = vpop.f32.mrf.mxu0 }
 0x968   : > { %v1513_v40 = vadd.f32 %v1512_v34, %v1484_v35 }
 0x969   : > { %v1514_v36 = vpop.f32.mrf.mxu1 }
 0x96d   : > { %v1546_v37 = vpop.f32.mrf.mxu2 }
 0x96e   : > { %v1550_v42 = vadd.f32 %v1546_v37, %v1513_v40 }
 0x96f   : > { %v1486_v38 = vpop.f32.mrf.mxu0  ;;  %v1581_v39 = vpop.f32.mrf.mxu3 }
 0x970   : > { %v1585_v44 = vadd.f32 %v1581_v39, %v1550_v42 }
 0x971   : > { %v1651_v41 = vpop.f32.mrf.mxu1 }
 0x975   : > { %v1548_v43 = vpop.f32.mrf.mxu2 }
 0x977   : > { %v1583_v45 = vpop.f32.mrf.mxu3  ;;  %v1616_v46 = vpop.f32.mrf.mxu0 }
 0x978   : > { %v1620_v47 = vadd.f32 %v1616_v46, %v1585_v44 }
 0x979   : > { %v1653_v48 = vpop.f32.mrf.mxu1 }
 0x97a   : > { %v1655_v49 = vadd.f32 %v1651_v41, %v1620_v47 }
 0x97d   : > { %v1686_v50 = vpop.f32.mrf.mxu2 }
 0x97e   : > { %v1690_v51 = vadd.f32 %v1686_v50, %v1655_v49 }
 0x97f   : > { %v1618_v52 = vpop.f32.mrf.mxu0  ;;  %v1721_v53 = vpop.f32.mrf.mxu3 }
 0x980   : > { %v1725_v55 = vadd.f32 %v1721_v53, %v1690_v51 }
 0x982   : > { %v1727_v56 = vadd.f32 %v1726_v54, %v1725_v55 }
 0x984   : > { %1728 = vst [vmem:[%s869_s14] sm:$0x1] %v1727_v56 }
 0x985   : > { %v1688_v57 = vpop.f32.mrf.mxu2 }
 0x987   : > { %v1723_v58 = vpop.f32.mrf.mxu3 }
 0x988 PF: > { %s3343_s2 = sld [smem:[#allocation25_spill]]  ;;  %s1740_s7 = sshll.u32 %s869_s14, 4  ;;  %s1741_s7 = int_to_ptr.vmem [resolvable:$true] %s1740_s7 }
 0x989   : > { %s3344_s18 = sld [smem:[#allocation53_spill]]  ;;  %s1730_s30 = scalar_lea.sflag [#allocation5], %s2987_s29 }
 0x98f   : > { %s1738_s12 = scalar_lea.hbm %s3344_s18, %s3343_s2  ;;  %s2553_s23 = scalar_lea.hbm %s3344_s18, 2 }
 0x990   : > { %s1742_s20 = sshll.u32 %s1738_s12, 4  ;;  %s1743_s20 = int_to_ptr.hbm [resolvable:$true] %s1742_s20 }
 0x991   : > { %s2547_s25 = sshra.s32 %s1743_s20, 4  ;;  %s2548_s25 = int_to_ptr.hbm [resolvable:$true] %s2547_s25 }
 0x992   : > { %s2549_s4 = scalar_lea.hbm %s2548_s25, 1  ;;  %p2554_p7 = scmp.lt.s32.totalorder %s2548_s25, %s3344_s18 }
 0x993   : > { %p2550_p11 = scmp.ne.s32.totalorder %s2548_s25, %s2549_s4  ;;  %p2555_p1 = scmp.lt.s32.totalorder %s2553_s23, %s2549_s4 }
 0x995   : > { %p2551_p4 = pnand %p2550_p11, %p2862_p8  ;;  %p2556_p10 = por %p2555_p1, %p2554_p7 }
 0x997   : > { %p2552_p5 = pneg %p2551_p4 }
 0x999   : > { %p2557_p12 = pnand %p2556_p10, %p2552_p5 }
 0x99b   : > { %2560 = shalt.err (!%p2557_p12)
}
 0x99c   : > { %2182 = dma.vmem_to_hbm [thread:$0]  (%p2862_p8), %s1741_s7, 16, %s1743_s20, %s1730_s30  }
 0x99d PF: > { %s3346_s29 = sld [smem:[#allocation28_spill]] }
 0x99e   : > { %s3347_s14 = sld [smem:[#allocation22_spill]] }
 0x99f   : > { %s3348_s17 = sld [smem:[#allocation30_spill]] }
 0x9a3   : > { %p2211_p13 = scmp.ge.s32.totalorder %s3346_s29, 2 }
 0x9a4   : > { %s1754_s24 = sand.u32 1, %s3347_s14  }
 0x9a5   : > { %p3349_p0 = scmp.ne.s32.totalorder %s3348_s17, 0  ;;  %s1755_s21 = scalar_lea.sflag [#allocation5], %s1754_s24 }
 0x9a7   : > { %p2205_p2 = pnand %p2211_p13, %p3349_p0 }
 0x9a9   : > { %p2206_p6 = pneg %p2205_p2 }
 0x9ab   : > { %2626 = dma.done.wait (%p2206_p6), %s1755_s21, 16  }
 0x9ac   : > { %2628 = vsyncadd (%p2206_p6), %s1755_s21, 4294967280  ;;  %s41_s2 = sadd.s32 1, %s3346_s29   ;;  %s3350_s5 = sld [smem:[#allocation21_spill]] }
 0x9ad   : > { %p38_p3 = scmp.ge.s32.totalorder %s41_s2, 6   ;;  %s3351_s29 = sld [smem:[#allocation33_spill]] }
 0x9ae   : > { %s3352_s3 = sld [smem:[#allocation23_spill]]  ;;  %s3358_s27 = smov %s2635_s28 }
 0x9af   : > { %s3353_s19 = sld [smem:[#allocation34_spill]]  ;;  %s3360_s30 = smov %s2647_s0 }
 0x9b0   : > { %s3354_s1 = sld [smem:[#allocation26_spill]]  ;;  %40 = sbr.rel (!%p38_p3) target bundleno = 34 (0x22), region = 231 }
 0x9b1   : > { %s3355_s20 = sld [smem:[#allocation27_spill]] }
 0x9b2   : > { %s3356_s21 = sld [smem:[#allocation31_spill]]  ;;  %s3359_s28 = smov %s3350_s5 }
 0x9b3   : > { %s3357_s22 = sld [smem:[#allocation32_spill]] }
 0x9b4   : > { %s3361_s0 = smov %s3352_s3 }
 0x9b5   :  { %1760 = vsyncpa [#allocation4], 1 }
 0x9b6   :  { %1762 = vsyncpa [#allocation4 + $0x1], 1 }
 0x9b7   :  { %1763 = vsyncpa [#allocation7], 1 }
 0x9b8   :  { %1765 = vsyncpa [#allocation7 + $0x1], 1 }
 0x9b9   :  { %1766 = vsyncpa [#allocation10], 1 }
 0x9ba   :  { %1768 = vsyncpa [#allocation10 + $0x1], 1 }
 0x9bb   :  { %1769 = vsyncpa [#allocation13], 1 }
 0x9bc   :  { %1770 = vsyncpa [#allocation5], 1 }
 0x9bd   :  { %1772 = vsyncpa [#allocation5 + $0x1], 1 }

</bundles_post_ra>
